<compile_context>
chip_gen: v7x
topology: tpu7x:2x2x1
jax: 0.10.0
libtpu: 0.0.40
codegen_flags: <defaults>
</compile_context>

<pallas_src>
import functools

import jax
import jax.numpy as jnp
from jax.experimental import pallas as pl
from jax.experimental.pallas import tpu as pltpu


_ACTS = {
    "relu": lambda y: jnp.maximum(y, 0.0),
    "silu": lambda y: y * jax.nn.sigmoid(y),
    "leakyrelu": lambda y: jnp.where(y >= 0, y, 0.01 * y),
    "selu": jax.nn.selu,
}


def _pick_rows_per_tile(h_out, w_out):
    """Smallest divisor `th` of h_out with th*w_out a multiple of 128 (lane-dense stores)."""
    for th in range(1, h_out + 1):
        if h_out % th == 0 and (th * w_out) % 128 == 0:
            return th
    return h_out  # tiny images: one tile, block equals the full array dims


def _conv_bn_act_kernel(x_ref, w_ref, b_ref, o_ref, *, k, th, w_out, c_in, c_out, act):
    """One (batch element, row-tile) step of Conv(kxk, stride 1) + folded BN + activation.

    x_ref: (1, C_in, Hp, Wp)     zero-padded input image for this batch element (NCHW planar)
    w_ref: (C_out, k*k*C_in)     BN-scale-folded weights; column index = (kh*k + kw)*C_in + ci
    b_ref: (C_out, 1)            folded BN bias
    o_ref: (1, C_out, th*w_out)  lane-dense output tile (row-major flattened spatial)
    """
    rt = pl.program_id(1)
    r0 = pl.multiple_of(rt * th, th)   # first padded-input row needed by this tile (stride 1)

    wmat = w_ref[...].astype(jnp.float32)   # (C_out, k*k*C_in) -- tiny, load once
    acc = jnp.zeros((c_out, th * w_out), jnp.float32)

    for kh in range(k):
        # Rows this vertical tap needs, for all input channels: (C_in, th, Wp).
        rows = x_ref[0, :, pl.ds(r0 + kh, th), :].astype(jnp.float32)
        for kw in range(k):
            # Lane-dense window: row-major flatten of the (th, w_out) window into the lane axis.
            win = jnp.concatenate(
                [rows[:, h, kw:kw + w_out] for h in range(th)], axis=-1)   # (C_in, th*w_out)
            base = (kh * k + kw) * c_in
            # Tiny-channel contraction: C_in full-vreg FMAs on the VPU.
            # TODO(synk): for C_in/C_out >= ~128 switch this per-tap contraction to a jnp.dot
            # on the MXU (bf16 operands on v6e/v7x, f32 accumulation).
            for ci in range(c_in):
                acc += wmat[:, base + ci:base + ci + 1] * win[ci:ci + 1, :]

    y = acc + b_ref[...].astype(jnp.float32)   # folded BN bias
    y = _ACTS[act](y)
    o_ref[0] = y.astype(o_ref.dtype)


def baseconv_forward(x_nchw, weight, bn_gamma, bn_beta, bn_mean, bn_var, *,
                     stride=1, eps=1e-5, act="relu", rows_per_tile=None):
    """BaseConv.forward (inference-mode BN).  x_nchw: (N, C_in, H, W); weight: (C_out, C_in, k, k)."""
    N, C_in, H, W = x_nchw.shape
    C_out, C_in_w, k, k2 = weight.shape
    assert k == k2
    assert C_in_w == C_in, "groups=1 only"   # TODO(synk): grouped conv (groups>1)
    assert stride == 1, "stride=1 only"      # TODO(synk): strided conv
    assert act in _ACTS
    pad = (k - 1) // 2
    Hp, Wp = H + 2 * pad, W + 2 * pad
    H_out, W_out = H, W

    # Fold BatchNorm (eval mode) into the conv weights + a per-channel bias.
    scale = (bn_gamma / jnp.sqrt(bn_var + eps)).astype(jnp.float32)          # (C_out,)
    w_folded = weight.astype(jnp.float32) * scale[:, None, None, None]       # (C_out, C_in, k, k)
    bias = (bn_beta - bn_mean * scale).astype(jnp.float32).reshape(C_out, 1)
    # Kernel weight layout: (C_out, k*k*C_in) with column (kh*k + kw)*C_in + ci.
    w_kernel = jnp.transpose(w_folded, (0, 2, 3, 1)).reshape(C_out, k * k * C_in)

    # The zero-pad is the single remaining wrapper pass (no layout transposes any more).
    # TODO(synk): fold the halo padding into the kernel (zeroed VMEM scratch) to drop this pass.
    x_pad = jnp.pad(x_nchw.astype(jnp.float32), ((0, 0), (0, 0), (pad, pad), (pad, pad)))

    th = rows_per_tile or _pick_rows_per_tile(H_out, W_out)
    n_tiles = H_out // th

    kernel = functools.partial(_conv_bn_act_kernel, k=k, th=th, w_out=W_out,
                               c_in=C_in, c_out=C_out, act=act)

    out_flat = pl.pallas_call(
        kernel,
        out_shape=jax.ShapeDtypeStruct((N, C_out, H_out * W_out), jnp.float32),
        grid_spec=pltpu.PrefetchScalarGridSpec(
            num_scalar_prefetch=0,
            grid=(N, n_tiles),
            in_specs=[
                # Full padded image for batch n (constant across row tiles -> no re-fetch).
                pl.BlockSpec((1, C_in, Hp, Wp), lambda n, t: (n, 0, 0, 0)),
                pl.BlockSpec((C_out, k * k * C_in), lambda n, t: (0, 0)),
                pl.BlockSpec((C_out, 1), lambda n, t: (0, 0)),
            ],
            # Lane-dense output tile: last dim th*W_out is a multiple of 128 (or the full dim).
            out_specs=pl.BlockSpec((1, C_out, th * W_out), lambda n, t: (n, 0, t)),
        ),
        compiler_params=pltpu.CompilerParams(
            dimension_semantics=("parallel", "parallel"),   # batch x row-tiles: megacore-friendly
            vmem_limit_bytes=48 * 1024 * 1024,              # explicit budget (v7x has 64 MiB VMEM)
        ),
    )(x_pad, w_kernel, bias)

    # Free reshape: (N, C_out, H*W) is already channel-major, row-major spatial == NCHW.
    return out_flat.reshape(N, C_out, H_out, W_out)


def _reference(x, weight, gamma, beta, mean, var, *, stride=1, eps=1e-5, act="relu"):
    """Pure-JAX reference: Conv2d -> BatchNorm2d (eval) -> activation."""
    pad = (weight.shape[-1] - 1) // 2
    y = jax.lax.conv_general_dilated(
        x.astype(jnp.float32), weight.astype(jnp.float32),
        window_strides=(stride, stride), padding=[(pad, pad), (pad, pad)],
        dimension_numbers=("NCHW", "OIHW", "NCHW"))
    scale = gamma / jnp.sqrt(var + eps)
    y = y * scale[None, :, None, None] + (beta - mean * scale)[None, :, None, None]
    return _ACTS[act](y)


if __name__ == "__main__":
    key = jax.random.PRNGKey(0)
    N, C_in, C_out, H, W, K = 2, 4, 8, 16, 16, 3

    k1, k2, k3, k4, k5, k6 = jax.random.split(key, 6)
    x = jax.random.normal(k1, (N, C_in, H, W), jnp.float32)
    weight = jax.random.normal(k2, (C_out, C_in, K, K), jnp.float32) * 0.2   # OIHW, bias=False

    # BatchNorm2d parameters (eval mode / running stats); non-trivial to exercise the BN fold.
    gamma = 1.0 + 0.1 * jax.random.normal(k3, (C_out,), jnp.float32)
    beta = 0.1 * jax.random.normal(k4, (C_out,), jnp.float32)
    mean = 0.1 * jax.random.normal(k5, (C_out,), jnp.float32)
    var = jax.random.uniform(k6, (C_out,), jnp.float32, minval=0.5, maxval=1.5)

    out = baseconv_forward(x, weight, gamma, beta, mean, var, stride=1, act="relu")
    out = jax.block_until_ready(out)

    ref = _reference(x, weight, gamma, beta, mean, var, stride=1, act="relu")
    assert out.shape == (N, C_out, H, W)
    assert jnp.allclose(out, ref, atol=1e-4, rtol=1e-4), "mismatch vs. reference"

    print("KERNEL_OK")
</pallas_src>

<mosaic_0001>
module attributes {stable_mosaic.version = 11 : i64} {
  func.func @_conv_bn_act_kernel(%arg0: i32, %arg1: i32, %arg2: memref<1x4x18x18xf32, #tpu.memory_space<vmem>>, %arg3: memref<8x36xf32, #tpu.memory_space<vmem>>, %arg4: memref<8x1xf32, #tpu.memory_space<vmem>>, %arg5: memref<1x8x128xf32, #tpu.memory_space<vmem>>) attributes {dimension_semantics = [#tpu.dimension_semantics<parallel>, #tpu.dimension_semantics<parallel>], iteration_bounds = array<i64: 2, 2>, scalar_prefetch = 0 : i64, scratch_operands = 0 : i64, tpu.core_type = #tpu.core_type<tc>, window_params = [{transform_indices = @transform_0, window_bounds = array<i64: 1, 4, 18, 18>}, {pipeline_mode = #tpu.pipeline_mode<synchronous>, transform_indices = @transform_1, window_bounds = array<i64: 8, 36>}, {pipeline_mode = #tpu.pipeline_mode<synchronous>, transform_indices = @transform_2, window_bounds = array<i64: 8, 1>}, {transform_indices = @transform_3, window_bounds = array<i64: 1, 8, 128>}]} {
    %c8_i32 = arith.constant 8 : i32
    %0 = arith.muli %arg1, %c8_i32 : i32
    %1 = tpu.assume_multiple %0, 8 : i32
    %c0 = arith.constant 0 : index
    %c0_0 = arith.constant 0 : index
    %2 = vector.load %arg3[%c0, %c0_0] : memref<8x36xf32, #tpu.memory_space<vmem>>, vector<8x36xf32>
    %cst = arith.constant 0.000000e+00 : f32
    %3 = vector.broadcast %cst : f32 to vector<8x128xf32>
    %c0_i32 = arith.constant 0 : i32
    %4 = arith.addi %1, %c0_i32 : i32
    %c0_1 = arith.constant 0 : index
    %c0_2 = arith.constant 0 : index
    %5 = arith.index_cast %4 : i32 to index
    %c0_3 = arith.constant 0 : index
    %6 = vector.load %arg2[%c0_1, %c0_2, %5, %c0_3] : memref<1x4x18x18xf32, #tpu.memory_space<vmem>>, vector<1x4x8x18xf32>
    %7 = vector.shape_cast %6 : vector<1x4x8x18xf32> to vector<4x8x18xf32>
    %8 = vector.extract_strided_slice %7 {offsets = [0, 0, 0], sizes = [4, 1, 16], strides = [1, 1, 1]} : vector<4x8x18xf32> to vector<4x1x16xf32>
    %9 = vector.shape_cast %8 : vector<4x1x16xf32> to vector<4x16xf32>
    %10 = vector.extract_strided_slice %7 {offsets = [0, 1, 0], sizes = [4, 1, 16], strides = [1, 1, 1]} : vector<4x8x18xf32> to vector<4x1x16xf32>
    %11 = vector.shape_cast %10 : vector<4x1x16xf32> to vector<4x16xf32>
    %12 = vector.extract_strided_slice %7 {offsets = [0, 2, 0], sizes = [4, 1, 16], strides = [1, 1, 1]} : vector<4x8x18xf32> to vector<4x1x16xf32>
    %13 = vector.shape_cast %12 : vector<4x1x16xf32> to vector<4x16xf32>
    %14 = vector.extract_strided_slice %7 {offsets = [0, 3, 0], sizes = [4, 1, 16], strides = [1, 1, 1]} : vector<4x8x18xf32> to vector<4x1x16xf32>
    %15 = vector.shape_cast %14 : vector<4x1x16xf32> to vector<4x16xf32>
    %16 = vector.extract_strided_slice %7 {offsets = [0, 4, 0], sizes = [4, 1, 16], strides = [1, 1, 1]} : vector<4x8x18xf32> to vector<4x1x16xf32>
    %17 = vector.shape_cast %16 : vector<4x1x16xf32> to vector<4x16xf32>
    %18 = vector.extract_strided_slice %7 {offsets = [0, 5, 0], sizes = [4, 1, 16], strides = [1, 1, 1]} : vector<4x8x18xf32> to vector<4x1x16xf32>
    %19 = vector.shape_cast %18 : vector<4x1x16xf32> to vector<4x16xf32>
    %20 = vector.extract_strided_slice %7 {offsets = [0, 6, 0], sizes = [4, 1, 16], strides = [1, 1, 1]} : vector<4x8x18xf32> to vector<4x1x16xf32>
    %21 = vector.shape_cast %20 : vector<4x1x16xf32> to vector<4x16xf32>
    %22 = vector.extract_strided_slice %7 {offsets = [0, 7, 0], sizes = [4, 1, 16], strides = [1, 1, 1]} : vector<4x8x18xf32> to vector<4x1x16xf32>
    %23 = vector.shape_cast %22 : vector<4x1x16xf32> to vector<4x16xf32>
    %24 = tpu.concatenate %9, %11, %13, %15, %17, %19, %21, %23 in 1 : vector<4x16xf32>, vector<4x16xf32>, vector<4x16xf32>, vector<4x16xf32>, vector<4x16xf32>, vector<4x16xf32>, vector<4x16xf32>, vector<4x16xf32> -> vector<4x128xf32>
    %25 = vector.extract_strided_slice %2 {offsets = [0, 0], sizes = [8, 1], strides = [1, 1]} : vector<8x36xf32> to vector<8x1xf32>
    %26 = vector.extract_strided_slice %24 {offsets = [0, 0], sizes = [1, 128], strides = [1, 1]} : vector<4x128xf32> to vector<1x128xf32>
    %27 = vector.broadcast %25 : vector<8x1xf32> to vector<8x128xf32>
    %28 = vector.broadcast %26 : vector<1x128xf32> to vector<8x128xf32>
    %29 = arith.mulf %27, %28 : vector<8x128xf32>
    %30 = arith.addf %3, %29 : vector<8x128xf32>
    %31 = vector.extract_strided_slice %2 {offsets = [0, 1], sizes = [8, 1], strides = [1, 1]} : vector<8x36xf32> to vector<8x1xf32>
    %32 = vector.extract_strided_slice %24 {offsets = [1, 0], sizes = [1, 128], strides = [1, 1]} : vector<4x128xf32> to vector<1x128xf32>
    %33 = vector.broadcast %31 : vector<8x1xf32> to vector<8x128xf32>
    %34 = vector.broadcast %32 : vector<1x128xf32> to vector<8x128xf32>
    %35 = arith.mulf %33, %34 : vector<8x128xf32>
    %36 = arith.addf %30, %35 : vector<8x128xf32>
    %37 = vector.extract_strided_slice %2 {offsets = [0, 2], sizes = [8, 1], strides = [1, 1]} : vector<8x36xf32> to vector<8x1xf32>
    %38 = vector.extract_strided_slice %24 {offsets = [2, 0], sizes = [1, 128], strides = [1, 1]} : vector<4x128xf32> to vector<1x128xf32>
    %39 = vector.broadcast %37 : vector<8x1xf32> to vector<8x128xf32>
    %40 = vector.broadcast %38 : vector<1x128xf32> to vector<8x128xf32>
    %41 = arith.mulf %39, %40 : vector<8x128xf32>
    %42 = arith.addf %36, %41 : vector<8x128xf32>
    %43 = vector.extract_strided_slice %2 {offsets = [0, 3], sizes = [8, 1], strides = [1, 1]} : vector<8x36xf32> to vector<8x1xf32>
    %44 = vector.extract_strided_slice %24 {offsets = [3, 0], sizes = [1, 128], strides = [1, 1]} : vector<4x128xf32> to vector<1x128xf32>
    %45 = vector.broadcast %43 : vector<8x1xf32> to vector<8x128xf32>
    %46 = vector.broadcast %44 : vector<1x128xf32> to vector<8x128xf32>
    %47 = arith.mulf %45, %46 : vector<8x128xf32>
    %48 = arith.addf %42, %47 : vector<8x128xf32>
    %49 = vector.extract_strided_slice %7 {offsets = [0, 0, 1], sizes = [4, 1, 16], strides = [1, 1, 1]} : vector<4x8x18xf32> to vector<4x1x16xf32>
    %50 = vector.shape_cast %49 : vector<4x1x16xf32> to vector<4x16xf32>
    %51 = vector.extract_strided_slice %7 {offsets = [0, 1, 1], sizes = [4, 1, 16], strides = [1, 1, 1]} : vector<4x8x18xf32> to vector<4x1x16xf32>
    %52 = vector.shape_cast %51 : vector<4x1x16xf32> to vector<4x16xf32>
    %53 = vector.extract_strided_slice %7 {offsets = [0, 2, 1], sizes = [4, 1, 16], strides = [1, 1, 1]} : vector<4x8x18xf32> to vector<4x1x16xf32>
    %54 = vector.shape_cast %53 : vector<4x1x16xf32> to vector<4x16xf32>
    %55 = vector.extract_strided_slice %7 {offsets = [0, 3, 1], sizes = [4, 1, 16], strides = [1, 1, 1]} : vector<4x8x18xf32> to vector<4x1x16xf32>
    %56 = vector.shape_cast %55 : vector<4x1x16xf32> to vector<4x16xf32>
    %57 = vector.extract_strided_slice %7 {offsets = [0, 4, 1], sizes = [4, 1, 16], strides = [1, 1, 1]} : vector<4x8x18xf32> to vector<4x1x16xf32>
    %58 = vector.shape_cast %57 : vector<4x1x16xf32> to vector<4x16xf32>
    %59 = vector.extract_strided_slice %7 {offsets = [0, 5, 1], sizes = [4, 1, 16], strides = [1, 1, 1]} : vector<4x8x18xf32> to vector<4x1x16xf32>
    %60 = vector.shape_cast %59 : vector<4x1x16xf32> to vector<4x16xf32>
    %61 = vector.extract_strided_slice %7 {offsets = [0, 6, 1], sizes = [4, 1, 16], strides = [1, 1, 1]} : vector<4x8x18xf32> to vector<4x1x16xf32>
    %62 = vector.shape_cast %61 : vector<4x1x16xf32> to vector<4x16xf32>
    %63 = vector.extract_strided_slice %7 {offsets = [0, 7, 1], sizes = [4, 1, 16], strides = [1, 1, 1]} : vector<4x8x18xf32> to vector<4x1x16xf32>
    %64 = vector.shape_cast %63 : vector<4x1x16xf32> to vector<4x16xf32>
    %65 = tpu.concatenate %50, %52, %54, %56, %58, %60, %62, %64 in 1 : vector<4x16xf32>, vector<4x16xf32>, vector<4x16xf32>, vector<4x16xf32>, vector<4x16xf32>, vector<4x16xf32>, vector<4x16xf32>, vector<4x16xf32> -> vector<4x128xf32>
    %66 = vector.extract_strided_slice %2 {offsets = [0, 4], sizes = [8, 1], strides = [1, 1]} : vector<8x36xf32> to vector<8x1xf32>
    %67 = vector.extract_strided_slice %65 {offsets = [0, 0], sizes = [1, 128], strides = [1, 1]} : vector<4x128xf32> to vector<1x128xf32>
    %68 = vector.broadcast %66 : vector<8x1xf32> to vector<8x128xf32>
    %69 = vector.broadcast %67 : vector<1x128xf32> to vector<8x128xf32>
    %70 = arith.mulf %68, %69 : vector<8x128xf32>
    %71 = arith.addf %48, %70 : vector<8x128xf32>
    %72 = vector.extract_strided_slice %2 {offsets = [0, 5], sizes = [8, 1], strides = [1, 1]} : vector<8x36xf32> to vector<8x1xf32>
    %73 = vector.extract_strided_slice %65 {offsets = [1, 0], sizes = [1, 128], strides = [1, 1]} : vector<4x128xf32> to vector<1x128xf32>
    %74 = vector.broadcast %72 : vector<8x1xf32> to vector<8x128xf32>
    %75 = vector.broadcast %73 : vector<1x128xf32> to vector<8x128xf32>
    %76 = arith.mulf %74, %75 : vector<8x128xf32>
    %77 = arith.addf %71, %76 : vector<8x128xf32>
    %78 = vector.extract_strided_slice %2 {offsets = [0, 6], sizes = [8, 1], strides = [1, 1]} : vector<8x36xf32> to vector<8x1xf32>
    %79 = vector.extract_strided_slice %65 {offsets = [2, 0], sizes = [1, 128], strides = [1, 1]} : vector<4x128xf32> to vector<1x128xf32>
    %80 = vector.broadcast %78 : vector<8x1xf32> to vector<8x128xf32>
    %81 = vector.broadcast %79 : vector<1x128xf32> to vector<8x128xf32>
    %82 = arith.mulf %80, %81 : vector<8x128xf32>
    %83 = arith.addf %77, %82 : vector<8x128xf32>
    %84 = vector.extract_strided_slice %2 {offsets = [0, 7], sizes = [8, 1], strides = [1, 1]} : vector<8x36xf32> to vector<8x1xf32>
    %85 = vector.extract_strided_slice %65 {offsets = [3, 0], sizes = [1, 128], strides = [1, 1]} : vector<4x128xf32> to vector<1x128xf32>
    %86 = vector.broadcast %84 : vector<8x1xf32> to vector<8x128xf32>
    %87 = vector.broadcast %85 : vector<1x128xf32> to vector<8x128xf32>
    %88 = arith.mulf %86, %87 : vector<8x128xf32>
    %89 = arith.addf %83, %88 : vector<8x128xf32>
    %90 = vector.extract_strided_slice %7 {offsets = [0, 0, 2], sizes = [4, 1, 16], strides = [1, 1, 1]} : vector<4x8x18xf32> to vector<4x1x16xf32>
    %91 = vector.shape_cast %90 : vector<4x1x16xf32> to vector<4x16xf32>
    %92 = vector.extract_strided_slice %7 {offsets = [0, 1, 2], sizes = [4, 1, 16], strides = [1, 1, 1]} : vector<4x8x18xf32> to vector<4x1x16xf32>
    %93 = vector.shape_cast %92 : vector<4x1x16xf32> to vector<4x16xf32>
    %94 = vector.extract_strided_slice %7 {offsets = [0, 2, 2], sizes = [4, 1, 16], strides = [1, 1, 1]} : vector<4x8x18xf32> to vector<4x1x16xf32>
    %95 = vector.shape_cast %94 : vector<4x1x16xf32> to vector<4x16xf32>
    %96 = vector.extract_strided_slice %7 {offsets = [0, 3, 2], sizes = [4, 1, 16], strides = [1, 1, 1]} : vector<4x8x18xf32> to vector<4x1x16xf32>
    %97 = vector.shape_cast %96 : vector<4x1x16xf32> to vector<4x16xf32>
    %98 = vector.extract_strided_slice %7 {offsets = [0, 4, 2], sizes = [4, 1, 16], strides = [1, 1, 1]} : vector<4x8x18xf32> to vector<4x1x16xf32>
    %99 = vector.shape_cast %98 : vector<4x1x16xf32> to vector<4x16xf32>
    %100 = vector.extract_strided_slice %7 {offsets = [0, 5, 2], sizes = [4, 1, 16], strides = [1, 1, 1]} : vector<4x8x18xf32> to vector<4x1x16xf32>
    %101 = vector.shape_cast %100 : vector<4x1x16xf32> to vector<4x16xf32>
    %102 = vector.extract_strided_slice %7 {offsets = [0, 6, 2], sizes = [4, 1, 16], strides = [1, 1, 1]} : vector<4x8x18xf32> to vector<4x1x16xf32>
    %103 = vector.shape_cast %102 : vector<4x1x16xf32> to vector<4x16xf32>
    %104 = vector.extract_strided_slice %7 {offsets = [0, 7, 2], sizes = [4, 1, 16], strides = [1, 1, 1]} : vector<4x8x18xf32> to vector<4x1x16xf32>
    %105 = vector.shape_cast %104 : vector<4x1x16xf32> to vector<4x16xf32>
    %106 = tpu.concatenate %91, %93, %95, %97, %99, %101, %103, %105 in 1 : vector<4x16xf32>, vector<4x16xf32>, vector<4x16xf32>, vector<4x16xf32>, vector<4x16xf32>, vector<4x16xf32>, vector<4x16xf32>, vector<4x16xf32> -> vector<4x128xf32>
    %107 = vector.extract_strided_slice %2 {offsets = [0, 8], sizes = [8, 1], strides = [1, 1]} : vector<8x36xf32> to vector<8x1xf32>
    %108 = vector.extract_strided_slice %106 {offsets = [0, 0], sizes = [1, 128], strides = [1, 1]} : vector<4x128xf32> to vector<1x128xf32>
    %109 = vector.broadcast %107 : vector<8x1xf32> to vector<8x128xf32>
    %110 = vector.broadcast %108 : vector<1x128xf32> to vector<8x128xf32>
    %111 = arith.mulf %109, %110 : vector<8x128xf32>
    %112 = arith.addf %89, %111 : vector<8x128xf32>
    %113 = vector.extract_strided_slice %2 {offsets = [0, 9], sizes = [8, 1], strides = [1, 1]} : vector<8x36xf32> to vector<8x1xf32>
    %114 = vector.extract_strided_slice %106 {offsets = [1, 0], sizes = [1, 128], strides = [1, 1]} : vector<4x128xf32> to vector<1x128xf32>
    %115 = vector.broadcast %113 : vector<8x1xf32> to vector<8x128xf32>
    %116 = vector.broadcast %114 : vector<1x128xf32> to vector<8x128xf32>
    %117 = arith.mulf %115, %116 : vector<8x128xf32>
    %118 = arith.addf %112, %117 : vector<8x128xf32>
    %119 = vector.extract_strided_slice %2 {offsets = [0, 10], sizes = [8, 1], strides = [1, 1]} : vector<8x36xf32> to vector<8x1xf32>
    %120 = vector.extract_strided_slice %106 {offsets = [2, 0], sizes = [1, 128], strides = [1, 1]} : vector<4x128xf32> to vector<1x128xf32>
    %121 = vector.broadcast %119 : vector<8x1xf32> to vector<8x128xf32>
    %122 = vector.broadcast %120 : vector<1x128xf32> to vector<8x128xf32>
    %123 = arith.mulf %121, %122 : vector<8x128xf32>
    %124 = arith.addf %118, %123 : vector<8x128xf32>
    %125 = vector.extract_strided_slice %2 {offsets = [0, 11], sizes = [8, 1], strides = [1, 1]} : vector<8x36xf32> to vector<8x1xf32>
    %126 = vector.extract_strided_slice %106 {offsets = [3, 0], sizes = [1, 128], strides = [1, 1]} : vector<4x128xf32> to vector<1x128xf32>
    %127 = vector.broadcast %125 : vector<8x1xf32> to vector<8x128xf32>
    %128 = vector.broadcast %126 : vector<1x128xf32> to vector<8x128xf32>
    %129 = arith.mulf %127, %128 : vector<8x128xf32>
    %130 = arith.addf %124, %129 : vector<8x128xf32>
    %c1_i32 = arith.constant 1 : i32
    %131 = arith.addi %1, %c1_i32 : i32
    %c0_4 = arith.constant 0 : index
    %c0_5 = arith.constant 0 : index
    %132 = arith.index_cast %131 : i32 to index
    %c0_6 = arith.constant 0 : index
    %133 = vector.load %arg2[%c0_4, %c0_5, %132, %c0_6] : memref<1x4x18x18xf32, #tpu.memory_space<vmem>>, vector<1x4x8x18xf32>
    %134 = vector.shape_cast %133 : vector<1x4x8x18xf32> to vector<4x8x18xf32>
    %135 = vector.extract_strided_slice %134 {offsets = [0, 0, 0], sizes = [4, 1, 16], strides = [1, 1, 1]} : vector<4x8x18xf32> to vector<4x1x16xf32>
    %136 = vector.shape_cast %135 : vector<4x1x16xf32> to vector<4x16xf32>
    %137 = vector.extract_strided_slice %134 {offsets = [0, 1, 0], sizes = [4, 1, 16], strides = [1, 1, 1]} : vector<4x8x18xf32> to vector<4x1x16xf32>
    %138 = vector.shape_cast %137 : vector<4x1x16xf32> to vector<4x16xf32>
    %139 = vector.extract_strided_slice %134 {offsets = [0, 2, 0], sizes = [4, 1, 16], strides = [1, 1, 1]} : vector<4x8x18xf32> to vector<4x1x16xf32>
    %140 = vector.shape_cast %139 : vector<4x1x16xf32> to vector<4x16xf32>
    %141 = vector.extract_strided_slice %134 {offsets = [0, 3, 0], sizes = [4, 1, 16], strides = [1, 1, 1]} : vector<4x8x18xf32> to vector<4x1x16xf32>
    %142 = vector.shape_cast %141 : vector<4x1x16xf32> to vector<4x16xf32>
    %143 = vector.extract_strided_slice %134 {offsets = [0, 4, 0], sizes = [4, 1, 16], strides = [1, 1, 1]} : vector<4x8x18xf32> to vector<4x1x16xf32>
    %144 = vector.shape_cast %143 : vector<4x1x16xf32> to vector<4x16xf32>
    %145 = vector.extract_strided_slice %134 {offsets = [0, 5, 0], sizes = [4, 1, 16], strides = [1, 1, 1]} : vector<4x8x18xf32> to vector<4x1x16xf32>
    %146 = vector.shape_cast %145 : vector<4x1x16xf32> to vector<4x16xf32>
    %147 = vector.extract_strided_slice %134 {offsets = [0, 6, 0], sizes = [4, 1, 16], strides = [1, 1, 1]} : vector<4x8x18xf32> to vector<4x1x16xf32>
    %148 = vector.shape_cast %147 : vector<4x1x16xf32> to vector<4x16xf32>
    %149 = vector.extract_strided_slice %134 {offsets = [0, 7, 0], sizes = [4, 1, 16], strides = [1, 1, 1]} : vector<4x8x18xf32> to vector<4x1x16xf32>
    %150 = vector.shape_cast %149 : vector<4x1x16xf32> to vector<4x16xf32>
    %151 = tpu.concatenate %136, %138, %140, %142, %144, %146, %148, %150 in 1 : vector<4x16xf32>, vector<4x16xf32>, vector<4x16xf32>, vector<4x16xf32>, vector<4x16xf32>, vector<4x16xf32>, vector<4x16xf32>, vector<4x16xf32> -> vector<4x128xf32>
    %152 = vector.extract_strided_slice %2 {offsets = [0, 12], sizes = [8, 1], strides = [1, 1]} : vector<8x36xf32> to vector<8x1xf32>
    %153 = vector.extract_strided_slice %151 {offsets = [0, 0], sizes = [1, 128], strides = [1, 1]} : vector<4x128xf32> to vector<1x128xf32>
    %154 = vector.broadcast %152 : vector<8x1xf32> to vector<8x128xf32>
    %155 = vector.broadcast %153 : vector<1x128xf32> to vector<8x128xf32>
    %156 = arith.mulf %154, %155 : vector<8x128xf32>
    %157 = arith.addf %130, %156 : vector<8x128xf32>
    %158 = vector.extract_strided_slice %2 {offsets = [0, 13], sizes = [8, 1], strides = [1, 1]} : vector<8x36xf32> to vector<8x1xf32>
    %159 = vector.extract_strided_slice %151 {offsets = [1, 0], sizes = [1, 128], strides = [1, 1]} : vector<4x128xf32> to vector<1x128xf32>
    %160 = vector.broadcast %158 : vector<8x1xf32> to vector<8x128xf32>
    %161 = vector.broadcast %159 : vector<1x128xf32> to vector<8x128xf32>
    %162 = arith.mulf %160, %161 : vector<8x128xf32>
    %163 = arith.addf %157, %162 : vector<8x128xf32>
    %164 = vector.extract_strided_slice %2 {offsets = [0, 14], sizes = [8, 1], strides = [1, 1]} : vector<8x36xf32> to vector<8x1xf32>
    %165 = vector.extract_strided_slice %151 {offsets = [2, 0], sizes = [1, 128], strides = [1, 1]} : vector<4x128xf32> to vector<1x128xf32>
    %166 = vector.broadcast %164 : vector<8x1xf32> to vector<8x128xf32>
    %167 = vector.broadcast %165 : vector<1x128xf32> to vector<8x128xf32>
    %168 = arith.mulf %166, %167 : vector<8x128xf32>
    %169 = arith.addf %163, %168 : vector<8x128xf32>
    %170 = vector.extract_strided_slice %2 {offsets = [0, 15], sizes = [8, 1], strides = [1, 1]} : vector<8x36xf32> to vector<8x1xf32>
    %171 = vector.extract_strided_slice %151 {offsets = [3, 0], sizes = [1, 128], strides = [1, 1]} : vector<4x128xf32> to vector<1x128xf32>
    %172 = vector.broadcast %170 : vector<8x1xf32> to vector<8x128xf32>
    %173 = vector.broadcast %171 : vector<1x128xf32> to vector<8x128xf32>
    %174 = arith.mulf %172, %173 : vector<8x128xf32>
    %175 = arith.addf %169, %174 : vector<8x128xf32>
    %176 = vector.extract_strided_slice %134 {offsets = [0, 0, 1], sizes = [4, 1, 16], strides = [1, 1, 1]} : vector<4x8x18xf32> to vector<4x1x16xf32>
    %177 = vector.shape_cast %176 : vector<4x1x16xf32> to vector<4x16xf32>
    %178 = vector.extract_strided_slice %134 {offsets = [0, 1, 1], sizes = [4, 1, 16], strides = [1, 1, 1]} : vector<4x8x18xf32> to vector<4x1x16xf32>
    %179 = vector.shape_cast %178 : vector<4x1x16xf32> to vector<4x16xf32>
    %180 = vector.extract_strided_slice %134 {offsets = [0, 2, 1], sizes = [4, 1, 16], strides = [1, 1, 1]} : vector<4x8x18xf32> to vector<4x1x16xf32>
    %181 = vector.shape_cast %180 : vector<4x1x16xf32> to vector<4x16xf32>
    %182 = vector.extract_strided_slice %134 {offsets = [0, 3, 1], sizes = [4, 1, 16], strides = [1, 1, 1]} : vector<4x8x18xf32> to vector<4x1x16xf32>
    %183 = vector.shape_cast %182 : vector<4x1x16xf32> to vector<4x16xf32>
    %184 = vector.extract_strided_slice %134 {offsets = [0, 4, 1], sizes = [4, 1, 16], strides = [1, 1, 1]} : vector<4x8x18xf32> to vector<4x1x16xf32>
    %185 = vector.shape_cast %184 : vector<4x1x16xf32> to vector<4x16xf32>
    %186 = vector.extract_strided_slice %134 {offsets = [0, 5, 1], sizes = [4, 1, 16], strides = [1, 1, 1]} : vector<4x8x18xf32> to vector<4x1x16xf32>
    %187 = vector.shape_cast %186 : vector<4x1x16xf32> to vector<4x16xf32>
    %188 = vector.extract_strided_slice %134 {offsets = [0, 6, 1], sizes = [4, 1, 16], strides = [1, 1, 1]} : vector<4x8x18xf32> to vector<4x1x16xf32>
    %189 = vector.shape_cast %188 : vector<4x1x16xf32> to vector<4x16xf32>
    %190 = vector.extract_strided_slice %134 {offsets = [0, 7, 1], sizes = [4, 1, 16], strides = [1, 1, 1]} : vector<4x8x18xf32> to vector<4x1x16xf32>
    %191 = vector.shape_cast %190 : vector<4x1x16xf32> to vector<4x16xf32>
    %192 = tpu.concatenate %177, %179, %181, %183, %185, %187, %189, %191 in 1 : vector<4x16xf32>, vector<4x16xf32>, vector<4x16xf32>, vector<4x16xf32>, vector<4x16xf32>, vector<4x16xf32>, vector<4x16xf32>, vector<4x16xf32> -> vector<4x128xf32>
    %193 = vector.extract_strided_slice %2 {offsets = [0, 16], sizes = [8, 1], strides = [1, 1]} : vector<8x36xf32> to vector<8x1xf32>
    %194 = vector.extract_strided_slice %192 {offsets = [0, 0], sizes = [1, 128], strides = [1, 1]} : vector<4x128xf32> to vector<1x128xf32>
    %195 = vector.broadcast %193 : vector<8x1xf32> to vector<8x128xf32>
    %196 = vector.broadcast %194 : vector<1x128xf32> to vector<8x128xf32>
    %197 = arith.mulf %195, %196 : vector<8x128xf32>
    %198 = arith.addf %175, %197 : vector<8x128xf32>
    %199 = vector.extract_strided_slice %2 {offsets = [0, 17], sizes = [8, 1], strides = [1, 1]} : vector<8x36xf32> to vector<8x1xf32>
    %200 = vector.extract_strided_slice %192 {offsets = [1, 0], sizes = [1, 128], strides = [1, 1]} : vector<4x128xf32> to vector<1x128xf32>
    %201 = vector.broadcast %199 : vector<8x1xf32> to vector<8x128xf32>
    %202 = vector.broadcast %200 : vector<1x128xf32> to vector<8x128xf32>
    %203 = arith.mulf %201, %202 : vector<8x128xf32>
    %204 = arith.addf %198, %203 : vector<8x128xf32>
    %205 = vector.extract_strided_slice %2 {offsets = [0, 18], sizes = [8, 1], strides = [1, 1]} : vector<8x36xf32> to vector<8x1xf32>
    %206 = vector.extract_strided_slice %192 {offsets = [2, 0], sizes = [1, 128], strides = [1, 1]} : vector<4x128xf32> to vector<1x128xf32>
    %207 = vector.broadcast %205 : vector<8x1xf32> to vector<8x128xf32>
    %208 = vector.broadcast %206 : vector<1x128xf32> to vector<8x128xf32>
    %209 = arith.mulf %207, %208 : vector<8x128xf32>
    %210 = arith.addf %204, %209 : vector<8x128xf32>
    %211 = vector.extract_strided_slice %2 {offsets = [0, 19], sizes = [8, 1], strides = [1, 1]} : vector<8x36xf32> to vector<8x1xf32>
    %212 = vector.extract_strided_slice %192 {offsets = [3, 0], sizes = [1, 128], strides = [1, 1]} : vector<4x128xf32> to vector<1x128xf32>
    %213 = vector.broadcast %211 : vector<8x1xf32> to vector<8x128xf32>
    %214 = vector.broadcast %212 : vector<1x128xf32> to vector<8x128xf32>
    %215 = arith.mulf %213, %214 : vector<8x128xf32>
    %216 = arith.addf %210, %215 : vector<8x128xf32>
    %217 = vector.extract_strided_slice %134 {offsets = [0, 0, 2], sizes = [4, 1, 16], strides = [1, 1, 1]} : vector<4x8x18xf32> to vector<4x1x16xf32>
    %218 = vector.shape_cast %217 : vector<4x1x16xf32> to vector<4x16xf32>
    %219 = vector.extract_strided_slice %134 {offsets = [0, 1, 2], sizes = [4, 1, 16], strides = [1, 1, 1]} : vector<4x8x18xf32> to vector<4x1x16xf32>
    %220 = vector.shape_cast %219 : vector<4x1x16xf32> to vector<4x16xf32>
    %221 = vector.extract_strided_slice %134 {offsets = [0, 2, 2], sizes = [4, 1, 16], strides = [1, 1, 1]} : vector<4x8x18xf32> to vector<4x1x16xf32>
    %222 = vector.shape_cast %221 : vector<4x1x16xf32> to vector<4x16xf32>
    %223 = vector.extract_strided_slice %134 {offsets = [0, 3, 2], sizes = [4, 1, 16], strides = [1, 1, 1]} : vector<4x8x18xf32> to vector<4x1x16xf32>
    %224 = vector.shape_cast %223 : vector<4x1x16xf32> to vector<4x16xf32>
    %225 = vector.extract_strided_slice %134 {offsets = [0, 4, 2], sizes = [4, 1, 16], strides = [1, 1, 1]} : vector<4x8x18xf32> to vector<4x1x16xf32>
    %226 = vector.shape_cast %225 : vector<4x1x16xf32> to vector<4x16xf32>
    %227 = vector.extract_strided_slice %134 {offsets = [0, 5, 2], sizes = [4, 1, 16], strides = [1, 1, 1]} : vector<4x8x18xf32> to vector<4x1x16xf32>
    %228 = vector.shape_cast %227 : vector<4x1x16xf32> to vector<4x16xf32>
    %229 = vector.extract_strided_slice %134 {offsets = [0, 6, 2], sizes = [4, 1, 16], strides = [1, 1, 1]} : vector<4x8x18xf32> to vector<4x1x16xf32>
    %230 = vector.shape_cast %229 : vector<4x1x16xf32> to vector<4x16xf32>
    %231 = vector.extract_strided_slice %134 {offsets = [0, 7, 2], sizes = [4, 1, 16], strides = [1, 1, 1]} : vector<4x8x18xf32> to vector<4x1x16xf32>
    %232 = vector.shape_cast %231 : vector<4x1x16xf32> to vector<4x16xf32>
    %233 = tpu.concatenate %218, %220, %222, %224, %226, %228, %230, %232 in 1 : vector<4x16xf32>, vector<4x16xf32>, vector<4x16xf32>, vector<4x16xf32>, vector<4x16xf32>, vector<4x16xf32>, vector<4x16xf32>, vector<4x16xf32> -> vector<4x128xf32>
    %234 = vector.extract_strided_slice %2 {offsets = [0, 20], sizes = [8, 1], strides = [1, 1]} : vector<8x36xf32> to vector<8x1xf32>
    %235 = vector.extract_strided_slice %233 {offsets = [0, 0], sizes = [1, 128], strides = [1, 1]} : vector<4x128xf32> to vector<1x128xf32>
    %236 = vector.broadcast %234 : vector<8x1xf32> to vector<8x128xf32>
    %237 = vector.broadcast %235 : vector<1x128xf32> to vector<8x128xf32>
    %238 = arith.mulf %236, %237 : vector<8x128xf32>
    %239 = arith.addf %216, %238 : vector<8x128xf32>
    %240 = vector.extract_strided_slice %2 {offsets = [0, 21], sizes = [8, 1], strides = [1, 1]} : vector<8x36xf32> to vector<8x1xf32>
    %241 = vector.extract_strided_slice %233 {offsets = [1, 0], sizes = [1, 128], strides = [1, 1]} : vector<4x128xf32> to vector<1x128xf32>
    %242 = vector.broadcast %240 : vector<8x1xf32> to vector<8x128xf32>
    %243 = vector.broadcast %241 : vector<1x128xf32> to vector<8x128xf32>
    %244 = arith.mulf %242, %243 : vector<8x128xf32>
    %245 = arith.addf %239, %244 : vector<8x128xf32>
    %246 = vector.extract_strided_slice %2 {offsets = [0, 22], sizes = [8, 1], strides = [1, 1]} : vector<8x36xf32> to vector<8x1xf32>
    %247 = vector.extract_strided_slice %233 {offsets = [2, 0], sizes = [1, 128], strides = [1, 1]} : vector<4x128xf32> to vector<1x128xf32>
    %248 = vector.broadcast %246 : vector<8x1xf32> to vector<8x128xf32>
    %249 = vector.broadcast %247 : vector<1x128xf32> to vector<8x128xf32>
    %250 = arith.mulf %248, %249 : vector<8x128xf32>
    %251 = arith.addf %245, %250 : vector<8x128xf32>
    %252 = vector.extract_strided_slice %2 {offsets = [0, 23], sizes = [8, 1], strides = [1, 1]} : vector<8x36xf32> to vector<8x1xf32>
    %253 = vector.extract_strided_slice %233 {offsets = [3, 0], sizes = [1, 128], strides = [1, 1]} : vector<4x128xf32> to vector<1x128xf32>
    %254 = vector.broadcast %252 : vector<8x1xf32> to vector<8x128xf32>
    %255 = vector.broadcast %253 : vector<1x128xf32> to vector<8x128xf32>
    %256 = arith.mulf %254, %255 : vector<8x128xf32>
    %257 = arith.addf %251, %256 : vector<8x128xf32>
    %c2_i32 = arith.constant 2 : i32
    %258 = arith.addi %1, %c2_i32 : i32
    %c0_7 = arith.constant 0 : index
    %c0_8 = arith.constant 0 : index
    %259 = arith.index_cast %258 : i32 to index
    %c0_9 = arith.constant 0 : index
    %260 = vector.load %arg2[%c0_7, %c0_8, %259, %c0_9] : memref<1x4x18x18xf32, #tpu.memory_space<vmem>>, vector<1x4x8x18xf32>
    %261 = vector.shape_cast %260 : vector<1x4x8x18xf32> to vector<4x8x18xf32>
    %262 = vector.extract_strided_slice %261 {offsets = [0, 0, 0], sizes = [4, 1, 16], strides = [1, 1, 1]} : vector<4x8x18xf32> to vector<4x1x16xf32>
    %263 = vector.shape_cast %262 : vector<4x1x16xf32> to vector<4x16xf32>
    %264 = vector.extract_strided_slice %261 {offsets = [0, 1, 0], sizes = [4, 1, 16], strides = [1, 1, 1]} : vector<4x8x18xf32> to vector<4x1x16xf32>
    %265 = vector.shape_cast %264 : vector<4x1x16xf32> to vector<4x16xf32>
    %266 = vector.extract_strided_slice %261 {offsets = [0, 2, 0], sizes = [4, 1, 16], strides = [1, 1, 1]} : vector<4x8x18xf32> to vector<4x1x16xf32>
    %267 = vector.shape_cast %266 : vector<4x1x16xf32> to vector<4x16xf32>
    %268 = vector.extract_strided_slice %261 {offsets = [0, 3, 0], sizes = [4, 1, 16], strides = [1, 1, 1]} : vector<4x8x18xf32> to vector<4x1x16xf32>
    %269 = vector.shape_cast %268 : vector<4x1x16xf32> to vector<4x16xf32>
    %270 = vector.extract_strided_slice %261 {offsets = [0, 4, 0], sizes = [4, 1, 16], strides = [1, 1, 1]} : vector<4x8x18xf32> to vector<4x1x16xf32>
    %271 = vector.shape_cast %270 : vector<4x1x16xf32> to vector<4x16xf32>
    %272 = vector.extract_strided_slice %261 {offsets = [0, 5, 0], sizes = [4, 1, 16], strides = [1, 1, 1]} : vector<4x8x18xf32> to vector<4x1x16xf32>
    %273 = vector.shape_cast %272 : vector<4x1x16xf32> to vector<4x16xf32>
    %274 = vector.extract_strided_slice %261 {offsets = [0, 6, 0], sizes = [4, 1, 16], strides = [1, 1, 1]} : vector<4x8x18xf32> to vector<4x1x16xf32>
    %275 = vector.shape_cast %274 : vector<4x1x16xf32> to vector<4x16xf32>
    %276 = vector.extract_strided_slice %261 {offsets = [0, 7, 0], sizes = [4, 1, 16], strides = [1, 1, 1]} : vector<4x8x18xf32> to vector<4x1x16xf32>
    %277 = vector.shape_cast %276 : vector<4x1x16xf32> to vector<4x16xf32>
    %278 = tpu.concatenate %263, %265, %267, %269, %271, %273, %275, %277 in 1 : vector<4x16xf32>, vector<4x16xf32>, vector<4x16xf32>, vector<4x16xf32>, vector<4x16xf32>, vector<4x16xf32>, vector<4x16xf32>, vector<4x16xf32> -> vector<4x128xf32>
    %279 = vector.extract_strided_slice %2 {offsets = [0, 24], sizes = [8, 1], strides = [1, 1]} : vector<8x36xf32> to vector<8x1xf32>
    %280 = vector.extract_strided_slice %278 {offsets = [0, 0], sizes = [1, 128], strides = [1, 1]} : vector<4x128xf32> to vector<1x128xf32>
    %281 = vector.broadcast %279 : vector<8x1xf32> to vector<8x128xf32>
    %282 = vector.broadcast %280 : vector<1x128xf32> to vector<8x128xf32>
    %283 = arith.mulf %281, %282 : vector<8x128xf32>
    %284 = arith.addf %257, %283 : vector<8x128xf32>
    %285 = vector.extract_strided_slice %2 {offsets = [0, 25], sizes = [8, 1], strides = [1, 1]} : vector<8x36xf32> to vector<8x1xf32>
    %286 = vector.extract_strided_slice %278 {offsets = [1, 0], sizes = [1, 128], strides = [1, 1]} : vector<4x128xf32> to vector<1x128xf32>
    %287 = vector.broadcast %285 : vector<8x1xf32> to vector<8x128xf32>
    %288 = vector.broadcast %286 : vector<1x128xf32> to vector<8x128xf32>
    %289 = arith.mulf %287, %288 : vector<8x128xf32>
    %290 = arith.addf %284, %289 : vector<8x128xf32>
    %291 = vector.extract_strided_slice %2 {offsets = [0, 26], sizes = [8, 1], strides = [1, 1]} : vector<8x36xf32> to vector<8x1xf32>
    %292 = vector.extract_strided_slice %278 {offsets = [2, 0], sizes = [1, 128], strides = [1, 1]} : vector<4x128xf32> to vector<1x128xf32>
    %293 = vector.broadcast %291 : vector<8x1xf32> to vector<8x128xf32>
    %294 = vector.broadcast %292 : vector<1x128xf32> to vector<8x128xf32>
    %295 = arith.mulf %293, %294 : vector<8x128xf32>
    %296 = arith.addf %290, %295 : vector<8x128xf32>
    %297 = vector.extract_strided_slice %2 {offsets = [0, 27], sizes = [8, 1], strides = [1, 1]} : vector<8x36xf32> to vector<8x1xf32>
    %298 = vector.extract_strided_slice %278 {offsets = [3, 0], sizes = [1, 128], strides = [1, 1]} : vector<4x128xf32> to vector<1x128xf32>
    %299 = vector.broadcast %297 : vector<8x1xf32> to vector<8x128xf32>
    %300 = vector.broadcast %298 : vector<1x128xf32> to vector<8x128xf32>
    %301 = arith.mulf %299, %300 : vector<8x128xf32>
    %302 = arith.addf %296, %301 : vector<8x128xf32>
    %303 = vector.extract_strided_slice %261 {offsets = [0, 0, 1], sizes = [4, 1, 16], strides = [1, 1, 1]} : vector<4x8x18xf32> to vector<4x1x16xf32>
    %304 = vector.shape_cast %303 : vector<4x1x16xf32> to vector<4x16xf32>
    %305 = vector.extract_strided_slice %261 {offsets = [0, 1, 1], sizes = [4, 1, 16], strides = [1, 1, 1]} : vector<4x8x18xf32> to vector<4x1x16xf32>
    %306 = vector.shape_cast %305 : vector<4x1x16xf32> to vector<4x16xf32>
    %307 = vector.extract_strided_slice %261 {offsets = [0, 2, 1], sizes = [4, 1, 16], strides = [1, 1, 1]} : vector<4x8x18xf32> to vector<4x1x16xf32>
    %308 = vector.shape_cast %307 : vector<4x1x16xf32> to vector<4x16xf32>
    %309 = vector.extract_strided_slice %261 {offsets = [0, 3, 1], sizes = [4, 1, 16], strides = [1, 1, 1]} : vector<4x8x18xf32> to vector<4x1x16xf32>
    %310 = vector.shape_cast %309 : vector<4x1x16xf32> to vector<4x16xf32>
    %311 = vector.extract_strided_slice %261 {offsets = [0, 4, 1], sizes = [4, 1, 16], strides = [1, 1, 1]} : vector<4x8x18xf32> to vector<4x1x16xf32>
    %312 = vector.shape_cast %311 : vector<4x1x16xf32> to vector<4x16xf32>
    %313 = vector.extract_strided_slice %261 {offsets = [0, 5, 1], sizes = [4, 1, 16], strides = [1, 1, 1]} : vector<4x8x18xf32> to vector<4x1x16xf32>
    %314 = vector.shape_cast %313 : vector<4x1x16xf32> to vector<4x16xf32>
    %315 = vector.extract_strided_slice %261 {offsets = [0, 6, 1], sizes = [4, 1, 16], strides = [1, 1, 1]} : vector<4x8x18xf32> to vector<4x1x16xf32>
    %316 = vector.shape_cast %315 : vector<4x1x16xf32> to vector<4x16xf32>
    %317 = vector.extract_strided_slice %261 {offsets = [0, 7, 1], sizes = [4, 1, 16], strides = [1, 1, 1]} : vector<4x8x18xf32> to vector<4x1x16xf32>
    %318 = vector.shape_cast %317 : vector<4x1x16xf32> to vector<4x16xf32>
    %319 = tpu.concatenate %304, %306, %308, %310, %312, %314, %316, %318 in 1 : vector<4x16xf32>, vector<4x16xf32>, vector<4x16xf32>, vector<4x16xf32>, vector<4x16xf32>, vector<4x16xf32>, vector<4x16xf32>, vector<4x16xf32> -> vector<4x128xf32>
    %320 = vector.extract_strided_slice %2 {offsets = [0, 28], sizes = [8, 1], strides = [1, 1]} : vector<8x36xf32> to vector<8x1xf32>
    %321 = vector.extract_strided_slice %319 {offsets = [0, 0], sizes = [1, 128], strides = [1, 1]} : vector<4x128xf32> to vector<1x128xf32>
    %322 = vector.broadcast %320 : vector<8x1xf32> to vector<8x128xf32>
    %323 = vector.broadcast %321 : vector<1x128xf32> to vector<8x128xf32>
    %324 = arith.mulf %322, %323 : vector<8x128xf32>
    %325 = arith.addf %302, %324 : vector<8x128xf32>
    %326 = vector.extract_strided_slice %2 {offsets = [0, 29], sizes = [8, 1], strides = [1, 1]} : vector<8x36xf32> to vector<8x1xf32>
    %327 = vector.extract_strided_slice %319 {offsets = [1, 0], sizes = [1, 128], strides = [1, 1]} : vector<4x128xf32> to vector<1x128xf32>
    %328 = vector.broadcast %326 : vector<8x1xf32> to vector<8x128xf32>
    %329 = vector.broadcast %327 : vector<1x128xf32> to vector<8x128xf32>
    %330 = arith.mulf %328, %329 : vector<8x128xf32>
    %331 = arith.addf %325, %330 : vector<8x128xf32>
    %332 = vector.extract_strided_slice %2 {offsets = [0, 30], sizes = [8, 1], strides = [1, 1]} : vector<8x36xf32> to vector<8x1xf32>
    %333 = vector.extract_strided_slice %319 {offsets = [2, 0], sizes = [1, 128], strides = [1, 1]} : vector<4x128xf32> to vector<1x128xf32>
    %334 = vector.broadcast %332 : vector<8x1xf32> to vector<8x128xf32>
    %335 = vector.broadcast %333 : vector<1x128xf32> to vector<8x128xf32>
    %336 = arith.mulf %334, %335 : vector<8x128xf32>
    %337 = arith.addf %331, %336 : vector<8x128xf32>
    %338 = vector.extract_strided_slice %2 {offsets = [0, 31], sizes = [8, 1], strides = [1, 1]} : vector<8x36xf32> to vector<8x1xf32>
    %339 = vector.extract_strided_slice %319 {offsets = [3, 0], sizes = [1, 128], strides = [1, 1]} : vector<4x128xf32> to vector<1x128xf32>
    %340 = vector.broadcast %338 : vector<8x1xf32> to vector<8x128xf32>
    %341 = vector.broadcast %339 : vector<1x128xf32> to vector<8x128xf32>
    %342 = arith.mulf %340, %341 : vector<8x128xf32>
    %343 = arith.addf %337, %342 : vector<8x128xf32>
    %344 = vector.extract_strided_slice %261 {offsets = [0, 0, 2], sizes = [4, 1, 16], strides = [1, 1, 1]} : vector<4x8x18xf32> to vector<4x1x16xf32>
    %345 = vector.shape_cast %344 : vector<4x1x16xf32> to vector<4x16xf32>
    %346 = vector.extract_strided_slice %261 {offsets = [0, 1, 2], sizes = [4, 1, 16], strides = [1, 1, 1]} : vector<4x8x18xf32> to vector<4x1x16xf32>
    %347 = vector.shape_cast %346 : vector<4x1x16xf32> to vector<4x16xf32>
    %348 = vector.extract_strided_slice %261 {offsets = [0, 2, 2], sizes = [4, 1, 16], strides = [1, 1, 1]} : vector<4x8x18xf32> to vector<4x1x16xf32>
    %349 = vector.shape_cast %348 : vector<4x1x16xf32> to vector<4x16xf32>
    %350 = vector.extract_strided_slice %261 {offsets = [0, 3, 2], sizes = [4, 1, 16], strides = [1, 1, 1]} : vector<4x8x18xf32> to vector<4x1x16xf32>
    %351 = vector.shape_cast %350 : vector<4x1x16xf32> to vector<4x16xf32>
    %352 = vector.extract_strided_slice %261 {offsets = [0, 4, 2], sizes = [4, 1, 16], strides = [1, 1, 1]} : vector<4x8x18xf32> to vector<4x1x16xf32>
    %353 = vector.shape_cast %352 : vector<4x1x16xf32> to vector<4x16xf32>
    %354 = vector.extract_strided_slice %261 {offsets = [0, 5, 2], sizes = [4, 1, 16], strides = [1, 1, 1]} : vector<4x8x18xf32> to vector<4x1x16xf32>
    %355 = vector.shape_cast %354 : vector<4x1x16xf32> to vector<4x16xf32>
    %356 = vector.extract_strided_slice %261 {offsets = [0, 6, 2], sizes = [4, 1, 16], strides = [1, 1, 1]} : vector<4x8x18xf32> to vector<4x1x16xf32>
    %357 = vector.shape_cast %356 : vector<4x1x16xf32> to vector<4x16xf32>
    %358 = vector.extract_strided_slice %261 {offsets = [0, 7, 2], sizes = [4, 1, 16], strides = [1, 1, 1]} : vector<4x8x18xf32> to vector<4x1x16xf32>
    %359 = vector.shape_cast %358 : vector<4x1x16xf32> to vector<4x16xf32>
    %360 = tpu.concatenate %345, %347, %349, %351, %353, %355, %357, %359 in 1 : vector<4x16xf32>, vector<4x16xf32>, vector<4x16xf32>, vector<4x16xf32>, vector<4x16xf32>, vector<4x16xf32>, vector<4x16xf32>, vector<4x16xf32> -> vector<4x128xf32>
    %361 = vector.extract_strided_slice %2 {offsets = [0, 32], sizes = [8, 1], strides = [1, 1]} : vector<8x36xf32> to vector<8x1xf32>
    %362 = vector.extract_strided_slice %360 {offsets = [0, 0], sizes = [1, 128], strides = [1, 1]} : vector<4x128xf32> to vector<1x128xf32>
    %363 = vector.broadcast %361 : vector<8x1xf32> to vector<8x128xf32>
    %364 = vector.broadcast %362 : vector<1x128xf32> to vector<8x128xf32>
    %365 = arith.mulf %363, %364 : vector<8x128xf32>
    %366 = arith.addf %343, %365 : vector<8x128xf32>
    %367 = vector.extract_strided_slice %2 {offsets = [0, 33], sizes = [8, 1], strides = [1, 1]} : vector<8x36xf32> to vector<8x1xf32>
    %368 = vector.extract_strided_slice %360 {offsets = [1, 0], sizes = [1, 128], strides = [1, 1]} : vector<4x128xf32> to vector<1x128xf32>
    %369 = vector.broadcast %367 : vector<8x1xf32> to vector<8x128xf32>
    %370 = vector.broadcast %368 : vector<1x128xf32> to vector<8x128xf32>
    %371 = arith.mulf %369, %370 : vector<8x128xf32>
    %372 = arith.addf %366, %371 : vector<8x128xf32>
    %373 = vector.extract_strided_slice %2 {offsets = [0, 34], sizes = [8, 1], strides = [1, 1]} : vector<8x36xf32> to vector<8x1xf32>
    %374 = vector.extract_strided_slice %360 {offsets = [2, 0], sizes = [1, 128], strides = [1, 1]} : vector<4x128xf32> to vector<1x128xf32>
    %375 = vector.broadcast %373 : vector<8x1xf32> to vector<8x128xf32>
    %376 = vector.broadcast %374 : vector<1x128xf32> to vector<8x128xf32>
    %377 = arith.mulf %375, %376 : vector<8x128xf32>
    %378 = arith.addf %372, %377 : vector<8x128xf32>
    %379 = vector.extract_strided_slice %2 {offsets = [0, 35], sizes = [8, 1], strides = [1, 1]} : vector<8x36xf32> to vector<8x1xf32>
    %380 = vector.extract_strided_slice %360 {offsets = [3, 0], sizes = [1, 128], strides = [1, 1]} : vector<4x128xf32> to vector<1x128xf32>
    %381 = vector.broadcast %379 : vector<8x1xf32> to vector<8x128xf32>
    %382 = vector.broadcast %380 : vector<1x128xf32> to vector<8x128xf32>
    %383 = arith.mulf %381, %382 : vector<8x128xf32>
    %384 = arith.addf %378, %383 : vector<8x128xf32>
    %c0_10 = arith.constant 0 : index
    %c0_11 = arith.constant 0 : index
    %385 = vector.load %arg4[%c0_10, %c0_11] : memref<8x1xf32, #tpu.memory_space<vmem>>, vector<8x1xf32>
    %386 = vector.broadcast %385 : vector<8x1xf32> to vector<8x128xf32>
    %387 = arith.addf %384, %386 : vector<8x128xf32>
    %cst_12 = arith.constant 0.000000e+00 : f32
    %388 = vector.broadcast %cst_12 : f32 to vector<8x128xf32>
    %389 = arith.maximumf %387, %388 : vector<8x128xf32>
    %c0_13 = arith.constant 0 : index
    %c0_14 = arith.constant 0 : index
    %c0_15 = arith.constant 0 : index
    %390 = vector.load %arg5[%c0_13, %c0_14, %c0_15] : memref<1x8x128xf32, #tpu.memory_space<vmem>>, vector<1x8x128xf32>
    %391 = vector.shape_cast %390 : vector<1x8x128xf32> to vector<8x128xf32>
    %392 = vector.shape_cast %389 : vector<8x128xf32> to vector<1x8x128xf32>
    tpu.vector_store %arg5[%c0_13, %c0_14, %c0_15], %392 {strides = array<i32>} : memref<1x8x128xf32, #tpu.memory_space<vmem>>, vector<1x8x128xf32>,
    return
  }
  func.func @transform_0(%arg0: i32, %arg1: i32) -> (i32, i32, i32, i32) {
    %c0_i32 = arith.constant 0 : i32
    %c0_i32_0 = arith.constant 0 : i32
    %c0_i32_1 = arith.constant 0 : i32
    %c0_i32_2 = arith.constant 0 : i32
    return %arg0, %c0_i32, %c0_i32_0, %c0_i32_1 : i32, i32, i32, i32
  }
  func.func @transform_1(%arg0: i32, %arg1: i32) -> (i32, i32) {
    %c0_i32 = arith.constant 0 : i32
    %c0_i32_0 = arith.constant 0 : i32
    %c0_i32_1 = arith.constant 0 : i32
    return %c0_i32, %c0_i32_0 : i32, i32
  }
  func.func @transform_2(%arg0: i32, %arg1: i32) -> (i32, i32) {
    %c0_i32 = arith.constant 0 : i32
    %c0_i32_0 = arith.constant 0 : i32
    %c0_i32_1 = arith.constant 0 : i32
    return %c0_i32, %c0_i32_0 : i32, i32
  }
  func.func @transform_3(%arg0: i32, %arg1: i32) -> (i32, i32, i32) {
    %c0_i32 = arith.constant 0 : i32
    %c0_i32_0 = arith.constant 0 : i32
    return %arg0, %c0_i32, %arg1 : i32, i32, i32
  }
}

</mosaic_0001>

<bundles_post_ra>
// kernel: tpu_custom_call.1
= control target key start
LH: loop header
LB: loop body
LE: loop exit
PB: predicated region body
PF: predicated region fallthrough
CT: control target
= control target key end

     0   :  { %8 = vsyncpa [#allocation3], 0  ;;  %s2175_s0 = inlined_call_operand.vmem [shape: f32[2,4,18,18], index: 0, kind: input, shape index: {}]   ;;  %s2176_s1 = inlined_call_operand.vmem [shape: f32[8,36], index: 1, kind: input, shape index: {}]   ;;  %s2177_s2 = inlined_call_operand.vmem [shape: f32[8,1], index: 2, kind: input, shape index: {}]   ;;  %s2178_s3 = inlined_call_operand.hbm [shape: f32[2,8,256], index: 3, kind: output, shape index: {}]  }
   0x1   :  { %10 = vsyncpa [#allocation3 + $0x1], 0  ;;  %s1488_s12 = smov 0   ;;  %s1490_s13 = smov 0  }
   0x2   :  { %s1492_s14 = smov 0   ;;  %s1494_s15 = smov 0  }
   0x3   :  { %s1496_s16 = smov 0   ;;  %s1498_s17 = smov 0  }
   0x4   :  { %s1500_s18 = smov 0   ;;  %s1502_s19 = smov 0  }
   0x5 LB: > { %s1119_s20 = sadd.s32 4294967295, %s1406_s19   ;;  %s1120_s21 = sadd.s32 4294967294, %s1406_s19   ;;  %s1406_s19 = sphi %s1502_s19, %s16_s19   ;;  %s1402_s18 = sphi %s1500_s18, %s2230_s18   ;;  %s1398_s17 = sphi %s1498_s17, %s2229_s17   ;;  %s1394_s16 = sphi %s1496_s16, %s2228_s16   ;;  %s1390_s15 = sphi %s1494_s15, %s2227_s15   ;;  %s1386_s14 = sphi %s1492_s14, %s2226_s14   ;;  %s1382_s13 = sphi %s1490_s13, %s2225_s13   ;;  %s1378_s12 = sphi %s1488_s12, %s2224_s12  }
   0x6   : > { %s25_s22 = sadd.s32 1, %s1398_s17  ;;  %s28_s23 = sadd.s32 1, %s1402_s18 }
   0x7   : > { %p26_p0 = scmp.ge.s32.totalorder %s25_s22, 2  ;;  %p115_p1 = scmp.ne.s32.totalorder %s1386_s14, %s1382_s13 }
   0x8   : > { %p116_p2 = scmp.eq.s32.totalorder %s1119_s20, 3  ;;  %p121_p5 = scmp.ne.s32.totalorder %s1382_s13, %s1378_s12 }
   0x9   : > { %s2232_s22 = smov (%p26_p0, %s25_s22), 0  ;;  %s2234_s23 = smov (!%p26_p0, %s28_s23), %s1402_s18 }
   0xa   : > { %s101_s24 = ssub.s32 %s1398_s17, %s2232_s22  ;;  %p1539_p3 = por %p116_p2, %p115_p1 }
   0xb   : > { %p30_p4 = scmp.ge.s32.totalorder %s2234_s23, 2  ;;  %p122_p6 = scmp.eq.s32.totalorder %s1120_s21, 3 }
   0xc   : > { %p1123_p7 = scmp.ge.s32.totalorder %s1406_s19, 1  ;;  %p154_p9 = scmp.lt.s32.totalorder %s1406_s19, 5 }
   0xd   : > { %s2236_s23 = smov (%p30_p4, %s2234_s23), 0  ;;  %p1548_p8 = por %p122_p6, %p121_p5 }
   0xe   : > { %s100_s27 = ssub.s32 %s1402_s18, %s2236_s23  ;;  %s105_s28 = sadd.s32 1, %s1386_s14 }
   0xf   : > { %s102_s29 = sor.u32 %s101_s24, %s100_s27  ;;  %p155_p10 = pnand %p1123_p7, %p154_p9 }
  0x10   : > { %p103_p11 = scmp.eq.s32.totalorder %s102_s29, 0  ;;  %v1562_v0 = vld [vmem:[%s2176_s1] sm:$0xff] (!%p155_p10)  ;;  %p178_p12 = scmp.lt.s32.totalorder (!%p155_p10), %s1394_s16, 1  ;;  %v1408_v1 = vmov (!%p155_p10), 0   ;;  %v1409_v2 = vmov (!%p155_p10), 1   ;;  %v1410_v3 = vmov (!%p155_p10), 2  }
  0x11   : > { %158 = sbr.rel (%p155_p10) target bundleno = 431 (0x1af), region = 32  ;;  %1273 = vset.pattern.permute.xlu1 (!%p155_p10), %v1408_v1  ;;  %1274 = vset.pattern.permute.xlu0 (!%p155_p10), %v1409_v2  ;;  %s1126_s8 = sshll.u32 (!%p155_p10), %s1390_s15, 3  ;;  %vm195_vm0 = vcmask (!%p155_p10), 1041409   ;;  %vm198_vm1 = vcmask (!%p155_p10), 1042434   ;;  %vm201_vm2 = vcmask (!%p155_p10), 1043459   ;;  %vm271_vm3 = vcmask (!%p155_p10), 130048  }
  0x12   : > { %s1557_s30 = scalar_select %p103_p11, %s1386_s14, %s105_s28  }
  0x13   : > { %287 = vperm.xlu1 (!%p155_p10), %1273, %v1562_v0   ;;  %s1411_s21 = smov (!%p155_p10), 48   ;;  %s1412_s24 = smov (!%p155_p10), 16   ;;  %vm273_vm4 = vcmask (!%p155_p10), 261120   ;;  %vm275_vm5 = vcmask (!%p155_p10), 392192   ;;  %vm277_vm6 = vcmask (!%p155_p10), 523264   ;;  %vm279_vm7 = vcmask (!%p155_p10), 654336  }
  0x14   : > { %s1413_s27 = smov (!%p155_p10), 64   ;;  %s2202_s28 = smov (!%p155_p10), 32   ;;  %vm281_vm8 = vcmask (!%p155_p10), 785408   ;;  %vm283_vm9 = vcmask (!%p155_p10), 916480  }
  0x15   : > { %s2200_s29 = smov (!%p155_p10), 96   ;;  %s2201_s4 = smov (!%p155_p10), 80  }
  0x16   : > { %s2197_s5 = smov (!%p155_p10), 112   ;;  %s2179_s9 = smov (!%p155_p10), 47  }
  0x17   : > { %1275 = vset.pattern.permute.xlu1 (!%p155_p10), %v1410_v3  ;;  %s1425_s10 = smov (!%p155_p10), 63  }
  0x18   : > { %s179_s6 = scalar_select %p178_p12, %s1394_s16, 1 }
  0x1a   : > { %s1142_s7 = smul.u32 96, %s179_s6  ;;  %s2199_s6 = smov 127  }
  0x1c   : > { %s182_s11 = scalar_lea.vmem %s2175_s0, %s1142_s7  ;;  %s2189_s7 = smov 15  }
  0x1d   : > { %s1572_s20 = scalar_lea.vmem %s182_s11, %s1126_s8  ;;  %s2198_s8 = smov 31  }
  0x1e   : > { %v1575_v4 = vld [vmem:[%s1572_s20] sm:$0xff]  ;;  %v1578_v5 = vld [vmem:[%s1572_s20 + $0x18] sm:$0xff]  ;;  %v1581_v6 = vld [vmem:[%s1572_s20 + $0x30] sm:$0xff]  ;;  %s2183_s11 = smov 79  }
  0x1f   : > { %v1584_v7 = vld [vmem:[%s1572_s20 + $0x48] sm:$0xff]  ;;  %v222_v8 = vrot.slane %v1575_v4, 3  ;;  %v223_v9 = vrot.slane %v1578_v5, 2  ;;  %v225_v10 = vrot.slane %v1581_v6, 1  ;;  %v204_v11 = vrot.slane %v1575_v4, 1  ;;  %v1651_v49 = vld [vmem:[%s1572_s20 + $0x31] sm:$0xff] }
  0x20   : > { %v206_v12 = vrot.slane %v1581_v6, 7  ;;  %v208_v13 = vrot.slane %v1584_v7, 6  ;;  %v231_v14 = vrot.slane %v1575_v4, 4  ;;  %v232_v15 = vrot.slane %v1578_v5, 3  ;;  %v1638_v44 = vld [vmem:[%s1572_s20 + $0x1] sm:$0xff]  ;;  %v1654_v50 = vld [vmem:[%s1572_s20 + $0x49] sm:$0xff] }
  0x21   : > { %v224_v16 = vsel %vm195_vm0, %v223_v9, %v222_v8  ;;  %v205_v17 = vsel %vm195_vm0, %v1578_v5, %v204_v11  ;;  %v234_v18 = vrot.slane %v1581_v6, 2  ;;  %v236_v19 = vrot.slane %v1584_v7, 1  ;;  %v1661_v55 = vld [vmem:[%s1572_s20 + $0x19] sm:$0xff] }
  0x22   : > { %v226_v20 = vsel %vm198_vm1, %v225_v10, %v224_v16  ;;  %v207_v21 = vsel %vm198_vm1, %v206_v12, %v205_v17  ;;  %v233_v22 = vsel %vm195_vm0, %v232_v15, %v231_v14  ;;  %v213_v23 = vrot.slane %v1575_v4, 2 }
  0x23   : > { %v1605_v24 = vsel %vm201_vm2, %v1584_v7, %v226_v20  ;;  %v1608_v25 = vsel %vm201_vm2, %v208_v13, %v207_v21  ;;  %v235_v26 = vsel %vm198_vm1, %v234_v18, %v233_v22  ;;  %v214_v27 = vrot.slane %v1578_v5, 1 }
  0x24   : > { %228 = vrot.lane.b32.xlu1 %v1605_v24, %s1411_s21  ;;  %210 = vrot.lane.b32.xlu0 %v1608_v25, %s1412_s24  ;;  %v1617_v28 = vsel %vm201_vm2, %v236_v19, %v235_v26  ;;  %v217_v29 = vrot.slane %v1584_v7, 7  ;;  %v251_v30 = vrot.slane %v1575_v4, 6  ;;  %v252_v31 = vrot.slane %v1578_v5, 5 }
  0x25   : > { %v215_v32 = vsel %vm195_vm0, %v214_v27, %v213_v23  ;;  %v254_v33 = vrot.slane %v1581_v6, 4  ;;  %v256_v34 = vrot.slane %v1584_v7, 3  ;;  %v241_v35 = vrot.slane %v1575_v4, 5 }
  0x26   : > { %v216_v36 = vsel %vm198_vm1, %v1581_v6, %v215_v32  ;;  %v253_v37 = vsel %vm195_vm0, %v252_v31, %v251_v30  ;;  %v242_v38 = vrot.slane %v1578_v5, 4  ;;  %v244_v39 = vrot.slane %v1581_v6, 3 }
  0x27   : > { %v1632_v40 = vsel %vm201_vm2, %v217_v29, %v216_v36  ;;  %v255_v41 = vsel %vm198_vm1, %v254_v33, %v253_v37  ;;  %v246_v42 = vrot.slane %v1584_v7, 2  ;;  %v261_v43 = vrot.slane %v1575_v4, 7 }
  0x28   : > { %238 = vrot.lane.b32.xlu1 %v1617_v28, %s1413_s27  ;;  %219 = vrot.lane.b32.xlu0 %v1632_v40, %s2202_s28  ;;  %v1645_v45 = vsel %vm201_vm2, %v256_v34, %v255_v41  ;;  %v243_v46 = vsel %vm195_vm0, %v242_v38, %v241_v35  ;;  %v262_v47 = vrot.slane %v1578_v5, 6  ;;  %v264_v48 = vrot.slane %v1581_v6, 5 }
  0x29   : > { %v245_v51 = vsel %vm198_vm1, %v244_v39, %v243_v46  ;;  %v266_v52 = vrot.slane %v1584_v7, 4  ;;  %v194_v53 = vrot.slane %v1578_v5, 7  ;;  %v197_v54 = vrot.slane %v1581_v6, 6 }
  0x2a   : > { %v1664_v56 = vsel %vm201_vm2, %v246_v42, %v245_v51  ;;  %v263_v57 = vsel %vm195_vm0, %v262_v47, %v261_v43  ;;  %v200_v58 = vrot.slane %v1584_v7, 5  ;;  %v485_v59 = vrot.slane %v1638_v44, 1 }
  0x2b   : > { %v265_v60 = vsel %vm198_vm1, %v264_v48, %v263_v57  ;;  %v196_v61 = vsel %vm195_vm0, %v194_v53, %v1575_v4  ;;  %v487_v62 = vrot.slane %v1651_v49, 7  ;;  %v489_v63 = vrot.slane %v1654_v50, 6 }
  0x2c   : > { %258 = vrot.lane.b32.xlu1 %v1645_v45, %s2200_s29  ;;  %248 = vrot.lane.b32.xlu0 %v1664_v56, %s2201_s4  ;;  %v1679_v2 = vsel %vm201_vm2, %v266_v52, %v265_v60  ;;  %v199_v3 = vsel %vm198_vm1, %v197_v54, %v196_v61  ;;  %v486_v4 = vsel %vm195_vm0, %v1661_v55, %v485_v59  ;;  %v494_v5 = vrot.slane %v1638_v44, 2 }
  0x2d   : > { %v1686_v6 = vsel %vm201_vm2, %v200_v58, %v199_v3  ;;  %v488_v7 = vsel %vm198_vm1, %v487_v62, %v486_v4  ;;  %v495_v8 = vrot.slane %v1661_v55, 1  ;;  %v498_v9 = vrot.slane %v1654_v50, 7  ;;  %v1771_v3 = vld [vmem:[%s1572_s20 + $0x32] sm:$0xff] }
  0x2e   : > { %v1692_v10 = vsel %vm201_vm2, %v489_v63, %v488_v7  ;;  %v503_v11 = vrot.slane %v1638_v44, 3  ;;  %v504_v12 = vrot.slane %v1661_v55, 2  ;;  %v506_v13 = vrot.slane %v1651_v49, 1  ;;  %v1778_v7 = vld [vmem:[%s1572_s20 + $0x4a] sm:$0xff] }
  0x2f   : > { %v496_v14 = vsel %vm195_vm0, %v495_v8, %v494_v5  ;;  %v512_v15 = vrot.slane %v1638_v44, 4  ;;  %v513_v16 = vrot.slane %v1661_v55, 3  ;;  %v515_v17 = vrot.slane %v1651_v49, 2  ;;  %v1775_v5 = vld [vmem:[%s1572_s20 + $0x1a] sm:$0xff] }
  0x30   : > { %307 = vperm.xlu1 %1275, %v1562_v0   ;;  %268 = vrot.lane.b32.xlu0 %v1679_v2, %s2197_s5  ;;  %v497_v18 = vsel %vm198_vm1, %v1651_v49, %v496_v14  ;;  %v505_v19 = vsel %vm195_vm0, %v504_v12, %v503_v11  ;;  %v517_v20 = vrot.slane %v1654_v50, 1  ;;  %v522_v21 = vrot.slane %v1638_v44, 5 }
  0x31   : > { %v1710_v22 = vsel %vm201_vm2, %v498_v9, %v497_v18  ;;  %v507_v23 = vsel %vm198_vm1, %v506_v13, %v505_v19  ;;  %v514_v26 = vsel %vm195_vm0, %v513_v16, %v512_v15  ;;  %v523_v27 = vrot.slane %v1661_v55, 4 }
  0x32   : > { %v1717_v29 = vsel %vm201_vm2, %v1654_v50, %v507_v23  ;;  %v516_v30 = vsel %vm198_vm1, %v515_v17, %v514_v26  ;;  %v525_v31 = vrot.slane %v1651_v49, 3  ;;  %v527_v32 = vrot.slane %v1654_v50, 2 }
  0x33   : > { %v1723_v33 = vsel %vm201_vm2, %v517_v20, %v516_v30  ;;  %v524_v34 = vsel %vm195_vm0, %v523_v27, %v522_v21  ;;  %v532_v35 = vrot.slane %v1638_v44, 6  ;;  %v533_v36 = vrot.slane %v1661_v55, 5 }
  0x34   : > { %v1418_v37 = vmov 3   ;;  %297 = vperm.xlu0 %1274, %v1562_v0   ;;  %v526_v38 = vsel %vm198_vm1, %v525_v31, %v524_v34  ;;  %v535_v39 = vrot.slane %v1651_v49, 4  ;;  %v537_v41 = vrot.slane %v1654_v50, 3 }
  0x35   : > { %1276 = vset.pattern.permute.xlu1 %v1418_v37  ;;  %v542_v42 = vrot.slane %v1638_v44, 7  ;;  %v1735_v43 = vsel %vm201_vm2, %v527_v32, %v526_v38  ;;  %v534_v46 = vsel %vm195_vm0, %v533_v36, %v532_v35  ;;  %v543_v47 = vrot.slane %v1661_v55, 6 }
  0x36   : > { %317 = vperm.xlu1 %1276, %v1562_v0   ;;  %v545_v48 = vrot.slane %v1651_v49, 5  ;;  %v536_v51 = vsel %vm198_vm1, %v535_v39, %v534_v46  ;;  %v547_v52 = vrot.slane %v1654_v50, 4  ;;  %v478_v53 = vrot.slane %v1661_v55, 7 }
  0x37   : > { %v480_v54 = vrot.slane %v1651_v49, 6  ;;  %v1745_v57 = vsel %vm201_vm2, %v537_v41, %v536_v51  ;;  %v544_v58 = vsel %vm195_vm0, %v543_v47, %v542_v42  ;;  %v482_v59 = vrot.slane %v1654_v50, 5 }
  0x38   : > { %326 = vrot.lane.b32.xlu0 %v1686_v6, %s2199_s6  ;;  %v546_v60 = vsel %vm198_vm1, %v545_v48, %v544_v58  ;;  %v479_v55 = vsel %vm195_vm0, %v478_v53, %v1638_v44  ;;  %v1421_v49 = vmov 4   ;;  %v1422_v62 = vmov 5   ;;  %v1768_v44 = vld [vmem:[%s1572_s20 + $0x2] sm:$0xff]  ;;  %s2191_s20 = smov 95  }
  0x39   : > { %1277 = vset.pattern.permute.xlu0 %v1421_v49  ;;  %v1757_v50 = vsel %vm201_vm2, %v547_v52, %v546_v60  ;;  %v481_v61 = vsel %vm198_vm1, %v480_v54, %v479_v55  ;;  %v758_v4 = vrot.slane %v1768_v44, 1  ;;  %v760_v8 = vrot.slane %v1771_v3, 7 }
  0x3a   : > { %329 = vrot.lane.b32.xlu1 %v1608_v25, %s2189_s7  ;;  %v1761_v63 = vsel %vm201_vm2, %v482_v59, %v481_v61  ;;  %v762_v11 = vrot.slane %v1778_v7, 6  ;;  %v767_v14 = vrot.slane %v1768_v44, 2  ;;  %v768_v15 = vrot.slane %v1775_v5, 1  ;;  %s2203_s7 = smov 94  }
  0x3b   : > { %1278 = vset.pattern.permute.xlu1 %v1422_v62  ;;  %v759_v9 = vsel %vm195_vm0, %v1775_v5, %v758_v4  ;;  %v771_v17 = vrot.slane %v1778_v7, 7  ;;  %v776_v20 = vrot.slane %v1768_v44, 3  ;;  %v777_v21 = vrot.slane %v1775_v5, 2 }
  0x3c   : > { %332 = vrot.lane.b32.xlu0 %v1632_v40, %s2198_s8  ;;  %v761_v12 = vsel %vm198_vm1, %v760_v8, %v759_v9  ;;  %v769_v16 = vsel %vm195_vm0, %v768_v15, %v767_v14  ;;  %v779_v23 = vrot.slane %v1771_v3, 1  ;;  %v795_v30 = vrot.slane %v1768_v44, 5 }
  0x3d   : > { %v1790_v13 = vsel %vm201_vm2, %v762_v11, %v761_v12  ;;  %v770_v18 = vsel %vm198_vm1, %v1771_v3, %v769_v16  ;;  %v778_v26 = vsel %vm195_vm0, %v777_v21, %v776_v20  ;;  %v796_v31 = vrot.slane %v1775_v5, 4 }
  0x3e   : > { %335 = vrot.lane.b32.xlu1 %v1605_v24, %s2179_s9  ;;  %s2181_s9 = smov 111   ;;  %v1803_v19 = vsel %vm201_vm2, %v771_v17, %v770_v18  ;;  %v780_v27 = vsel %vm198_vm1, %v779_v23, %v778_v26  ;;  %v798_v34 = vrot.slane %v1771_v3, 3  ;;  %v785_v35 = vrot.slane %v1768_v44, 4 }
  0x3f   : > { %v1816_v32 = vsel %vm201_vm2, %v1778_v7, %v780_v27  ;;  %v786_v36 = vrot.slane %v1775_v5, 3  ;;  %v1429_v37 = vmov 7   ;;  %v797_v38 = vsel %vm195_vm0, %v796_v31, %v795_v30 }
  0x40   : > { %338 = vrot.lane.b32.xlu0 %v1617_v28, %s1425_s10  ;;  %v800_v39 = vrot.slane %v1778_v7, 2  ;;  %v788_v41 = vrot.slane %v1771_v3, 2  ;;  %v1430_v42 = vmov 6   ;;  %v799_v46 = vsel %vm198_vm1, %v798_v34, %v797_v38 }
  0x41   : > { %v787_v47 = vsel %vm195_vm0, %v786_v36, %v785_v35  ;;  %v790_v48 = vrot.slane %v1778_v7, 1  ;;  %v805_v53 = vrot.slane %v1768_v44, 6  ;;  %v806_v54 = vrot.slane %v1775_v5, 5 }
  0x42   : > { %341 = vrot.lane.b32.xlu1 %v1664_v56, %s2183_s11  ;;  %v1830_v51 = vsel %vm201_vm2, %v800_v39, %v799_v46  ;;  %v789_v52 = vsel %vm198_vm1, %v788_v41, %v787_v47  ;;  %v808_v59 = vrot.slane %v1771_v3, 4  ;;  %v810_v55 = vrot.slane %v1778_v7, 3  ;;  %s2187_s11 = smov 126  }
  0x43   : > { %v1836_v58 = vsel %vm201_vm2, %v790_v48, %v789_v52  ;;  %v807_v60 = vsel %vm195_vm0, %v806_v54, %v805_v53  ;;  %v1433_v61 = vmov 8   ;;  %v815_v4 = vrot.slane %v1768_v44, 7 }
  0x44   : > { %344 = vrot.lane.b32.xlu0 %v1645_v45, %s2191_s20  ;;  %v809_v49 = vsel %vm198_vm1, %v808_v59, %v807_v60  ;;  %v816_v8 = vrot.slane %v1775_v5, 6  ;;  %v1434_v9 = vmov 9   ;;  %v818_v11 = vrot.slane %v1771_v3, 5  ;;  %s2195_s20 = smov 46  }
  0x45   : > { %v1847_v62 = vsel %vm201_vm2, %v810_v55, %v809_v49  ;;  %v820_v12 = vrot.slane %v1778_v7, 4  ;;  %v751_v16 = vrot.slane %v1775_v5, 7  ;;  %v1446_v5 = vmov 14  }
  0x46   : > { %347 = vrot.lane.b32.xlu1 %v1679_v2, %s2181_s9  ;;  %s2185_s9 = smov 30   ;;  %v1448_v20 = vmov 19   ;;  %v1449_v21 = vmov 17   ;;  %v1450_v23 = vmov 20   ;;  %v1452_v38 = vmov 18  }
  0x47   : > { %v752_v17 = vsel %vm195_vm0, %v751_v16, %v1768_v44  ;;  %v1442_v44 = vmov 13   ;;  %v290_v46 = vlaneseq  ;;  %v1453_v48 = vmov 25  }
  0x48   : > { %358 = vperm.xlu0 %1277, %v1562_v0   ;;  %v1454_v52 = vmov 21  }
  0x49   : > { %v291_v53 = vshrl.u32 %v290_v46, 7 }
  0x4a   : > { %368 = vperm.xlu1 %1278, %v1562_v0  }
  0x4b   : > { %v1945_v54 = vsub.s32 0, %v291_v53  ;;  %v1950_v59 = vsub.s32 1, %v291_v53  ;;  %v1953_v49 = vsub.s32 2, %v291_v53 }
  0x4c   : > { %1280 = vset.pattern.permute.xlu0 %v1429_v37 }
  0x4d   : > { %388 = vperm.xlu0 %1280, %v1562_v0  }
  0x4e   : > { %1279 = vset.pattern.permute.xlu1 %v1430_v42 }
  0x4f   : > { %378 = vperm.xlu1 %1279, %v1562_v0  }
  0x51   : > { %403 = vrot.lane.b32.xlu0 %v1632_v40, %s2185_s9  ;;  %v817_v40 = vsel %vm195_vm0, %v816_v8, %v815_v4  ;;  %s2204_s9 = smov 62   ;;  %v1959_v4 = vsub.s32 3, %v291_v53 }
  0x52   : > { %1281 = vset.pattern.permute.xlu0 %v1433_v61  ;;  %v819_v14 = vsel %vm198_vm1, %v818_v11, %v817_v40  ;;  %v1455_v61 = vmov 26  }
  0x53   : > { %397 = vrot.lane.b32.xlu1 %v1686_v6, %s2187_s11  ;;  %s2193_s11 = smov 14   ;;  %v1860_v15 = vsel %vm201_vm2, %v820_v12, %v819_v14 }
  0x54   : > { %1282 = vset.pattern.permute.xlu1 %v1434_v9 }
  0x55   : > { %409 = vrot.lane.b32.xlu0 %v1617_v28, %s2204_s9  ;;  %v753_v28 = vrot.slane %v1771_v3, 6  ;;  %v1443_v3 = vmov 10  }
  0x57   : > { %400 = vrot.lane.b32.xlu1 %v1608_v25, %s2193_s11  ;;  %v755_v25 = vrot.slane %v1778_v7, 5  ;;  %v754_v18 = vsel %vm198_vm1, %v753_v28, %v752_v17  ;;  %s1439_s11 = smov 78   ;;  %v1447_v7 = vmov 15  }
  0x59   : > { %415 = vrot.lane.b32.xlu0 %v1645_v45, %s2203_s7  ;;  %v1876_v45 = vsel %vm201_vm2, %v755_v25, %v754_v18 }
  0x5b   : > { %406 = vrot.lane.b32.xlu1 %v1605_v24, %s2195_s20  ;;  %v1440_v24 = vmov 11   ;;  %s1441_s20 = smov 110  }
  0x5d   : > { %429 = vperm.xlu0 %1281, %v1562_v0  }
  0x5f   : > { %412 = vrot.lane.b32.xlu1 %v1664_v56, %s1439_s11  ;;  %v1444_v56 = vmov 12  }
  0x61   : > { %1284 = vset.pattern.permute.xlu0 %v1440_v24 }
  0x62   : > { %459 = vperm.xlu0 %1284, %v1562_v0  }
  0x63   : > { %418 = vrot.lane.b32.xlu1 %v1679_v2, %s1441_s20  ;;  %v1445_v2 = vmov 16  }
  0x66   : > { %509 = vrot.lane.b32.xlu0 %v1717_v29, %s1411_s21 }
  0x67   : > { %439 = vperm.xlu1 %1282, %v1562_v0   ;;  %1286 = vset.pattern.permute.xlu0 %v1442_v44 }
  0x6a   : > { %529 = vrot.lane.b32.xlu0 %v1735_v43, %s2201_s4  ;;  %s2211_s4 = smov 79  }
  0x6b   : > { %1283 = vset.pattern.permute.xlu1 %v1443_v3 }
  0x6c   : > { %449 = vperm.xlu1 %1283, %v1562_v0  }
  0x6e   : > { %549 = vrot.lane.b32.xlu0 %v1757_v50, %s2197_s5  ;;  %s2207_s5 = smov 95  }
  0x70   : > { %491 = vrot.lane.b32.xlu1 %v1692_v10, %s1412_s24 }
  0x71   : > { %1285 = vset.pattern.permute.xlu1 %v1444_v56 }
  0x72   : > { %570 = vperm.xlu0 %1286, %v1562_v0  }
  0x74   : > { %500 = vrot.lane.b32.xlu1 %v1710_v22, %s2202_s28  ;;  %s2212_s28 = smov 111  }
  0x76   : > { %599 = vrot.lane.b32.xlu0 %v1761_v63, %s2199_s6  ;;  %s2209_s6 = smov 30  }
  0x77   : > { %1289 = vset.pattern.permute.xlu0 %v1445_v2 }
  0x78   : > { %519 = vrot.lane.b32.xlu1 %v1723_v33, %s1413_s27 }
  0x7a   : > { %605 = vrot.lane.b32.xlu0 %v1710_v22, %s2198_s8  ;;  %s2208_s8 = smov 15  }
  0x7c   : > { %539 = vrot.lane.b32.xlu1 %v1745_v57, %s2200_s29  ;;  %s2210_s29 = smov 47  }
  0x7e   : > { %611 = vrot.lane.b32.xlu0 %v1723_v33, %s1425_s10 }
  0x80   : > { %560 = vperm.xlu1 %1285, %v1562_v0  }
  0x82   : > { %617 = vrot.lane.b32.xlu0 %v1745_v57, %s2207_s5 }
  0x84   : > { %1287 = vset.pattern.permute.xlu1 %v1446_v5 }
  0x85   : > { %580 = vperm.xlu1 %1287, %v1562_v0  }
  0x86   : > { %631 = vperm.xlu0 %1289, %v1562_v0  }
  0x89   : > { %1288 = vset.pattern.permute.xlu1 %v1447_v7 }
  0x8a   : > { %590 = vperm.xlu1 %1288, %v1562_v0   ;;  %1292 = vset.pattern.permute.xlu0 %v1448_v20 }
  0x8b   : > { %661 = vperm.xlu0 %1292, %v1562_v0  }
  0x8e   : > { %602 = vrot.lane.b32.xlu1 %v1692_v10, %s2208_s8 }
  0x8f   : > { %1290 = vset.pattern.permute.xlu1 %v1449_v21  ;;  %676 = vrot.lane.b32.xlu0 %v1710_v22, %s2209_s6 }
  0x90   : > { %1293 = vset.pattern.permute.xlu0 %v1450_v23 }
  0x92   : > { %608 = vrot.lane.b32.xlu1 %v1717_v29, %s2210_s29  ;;  %v288_v27 = vpop.permute.xlu1 %287 }
  0x93   : > { %682 = vrot.lane.b32.xlu0 %v1723_v33, %s2204_s9  ;;  %s2214_s9 = smov 14  }
  0x96   : > { %614 = vrot.lane.b32.xlu1 %v1735_v43, %s2211_s4  ;;  %v211_v26 = vpop.permute.xlu0 %210  ;;  %v229_v33 = vpop.permute.xlu1 %228 }
  0x97   : > { %688 = vrot.lane.b32.xlu0 %v1745_v57, %s2203_s7  ;;  %v272_v22 = vsel %vm271_vm3, %v1686_v6, %v211_v26  ;;  %v1451_v6 = vmov 23   ;;  %s2213_s7 = smov 126  }
  0x9a   : > { %620 = vrot.lane.b32.xlu1 %v1757_v50, %s2212_s28  ;;  %v220_v30 = vpop.permute.xlu0 %219  ;;  %v239_v35 = vpop.permute.xlu1 %238 }
  0x9b   : > { %v274_v31 = vsel %vm273_vm4, %v272_v22, %v220_v30  ;;  %702 = vperm.xlu0 %1293, %v1562_v0   ;;  %v1458_v30 = vmov 24  }
  0x9c   : > { %v276_v57 = vsel %vm275_vm5, %v274_v31, %v229_v33  ;;  %v1459_v33 = vmov 30  }
  0x9d   : > { %v278_v36 = vsel %vm277_vm6, %v276_v57, %v239_v35 }
  0x9e   : > { %641 = vperm.xlu1 %1290, %v1562_v0   ;;  %v249_v34 = vpop.permute.xlu0 %248  ;;  %v259_v41 = vpop.permute.xlu1 %258 }
  0x9f   : > { %1296 = vset.pattern.permute.xlu0 %v1451_v6  ;;  %v280_v37 = vsel %vm279_vm7, %v278_v36, %v249_v34 }
  0xa0   : > { %732 = vperm.xlu0 %1296, %v1562_v0   ;;  %v282_v42 = vsel %vm281_vm8, %v280_v37, %v259_v41  ;;  %v1460_v41 = vmov 33  }
  0xa2   : > { %1291 = vset.pattern.permute.xlu1 %v1452_v38  ;;  %v269_v39 = vpop.permute.xlu0 %268 }
  0xa3   : > { %651 = vperm.xlu1 %1291, %v1562_v0   ;;  %v284_v47 = vsel %vm283_vm9, %v282_v42, %v269_v39 }
  0xa4   : > { %782 = vrot.lane.b32.xlu0 %v1816_v32, %s1411_s21  ;;  %s2215_s21 = smov 46   ;;  %v293_v55 = vrot.slane %v284_v47, %v1945_v54  ;;  %v323_v16 = vrot.slane %v284_v47, %v1959_v4 }
  0xa5   : > { %1298 = vset.pattern.permute.xlu0 %v1453_v48 }
  0xa6   : > { %v294_v9 = vmul.f32 %v293_v55, %v288_v27  ;;  %v1461_v55 = vmov 27  }
  0xa7   : > { %670 = vrot.lane.b32.xlu1 %v1761_v63, %s2213_s7 }
  0xa8   : > { %1294 = vset.pattern.permute.xlu1 %v1454_v52  ;;  %792 = vrot.lane.b32.xlu0 %v1836_v58, %s1413_s27  ;;  %s2216_s27 = smov 32  }
  0xab   : > { %673 = vrot.lane.b32.xlu1 %v1692_v10, %s2214_s9  ;;  %v303_v10 = vrot.slane %v284_v47, %v1950_v59 }
  0xac   : > { %843 = vperm.xlu0 %1298, %v1562_v0  }
  0xaf   : > { %679 = vrot.lane.b32.xlu1 %v1717_v29, %s2215_s21  ;;  %v308_v60 = vpop.permute.xlu1 %307  ;;  %v313_v29 = vrot.slane %v284_v47, %v1953_v49 }
  0xb0   : > { %1299 = vset.pattern.permute.xlu0 %v1455_v61 }
  0xb1   : > { %853 = vperm.xlu0 %1299, %v1562_v0   ;;  %v314_v12 = vmul.f32 %v313_v29, %v308_v60 }
  0xb3   : > { %685 = vrot.lane.b32.xlu1 %v1735_v43, %s1439_s11  ;;  %v298_v8 = vpop.permute.xlu0 %297  ;;  %v1456_v43 = vmov 29  }
  0xb4   : > { %v304_v11 = vmul.f32 %v303_v10, %v298_v8 }
  0xb5   : > { %v318_v40 = vpop.permute.xlu1 %317  ;;  %875 = vrot.lane.b32.xlu0 %v1790_v13, %s2208_s8  ;;  %s2219_s8 = smov 96  }
  0xb6   : > { %v305_v14 = vadd.f32 %v304_v11, %v294_v9  ;;  %1302 = vset.pattern.permute.xlu0 %v1456_v43  ;;  %v324_v25 = vmul.f32 %v323_v16, %v318_v40 }
  0xb7   : > { %691 = vrot.lane.b32.xlu1 %v1757_v50, %s1441_s20  ;;  %v327_v28 = vpop.permute.xlu0 %326  ;;  %v1457_v50 = vmov 22  }
  0xb8   : > { %v315_v17 = vadd.f32 %v314_v12, %v305_v14  ;;  %v1462_v14 = vmov 34  }
  0xb9   : > { %v330_v18 = vpop.permute.xlu1 %329  ;;  %881 = vrot.lane.b32.xlu0 %v1816_v32, %s2210_s29  ;;  %s2218_s29 = smov 62  }
  0xba   : > { %v325_v24 = vadd.f32 %v324_v25, %v315_v17  ;;  %v350_v44 = vsel %vm271_vm3, %v327_v28, %v330_v18  ;;  %v1463_v25 = vmov 28  }
  0xbb   : > { %712 = vperm.xlu1 %1294, %v1562_v0   ;;  %v333_v3 = vpop.permute.xlu0 %332 }
  0xbc   : > { %v351_v56 = vsel %vm273_vm4, %v350_v44, %v333_v3 }
  0xbd   : > { %v336_v2 = vpop.permute.xlu1 %335  ;;  %884 = vrot.lane.b32.xlu0 %v1836_v58, %s1425_s10  ;;  %s2221_s10 = smov 127  }
  0xbe   : > { %v352_v5 = vsel %vm275_vm5, %v351_v56, %v336_v2 }
  0xbf   : > { %1295 = vset.pattern.permute.xlu1 %v1457_v50  ;;  %v339_v7 = vpop.permute.xlu0 %338 }
  0xc0   : > { %722 = vperm.xlu1 %1295, %v1562_v0   ;;  %v353_v20 = vsel %vm277_vm6, %v352_v5, %v339_v7 }
  0xc1   : > { %v342_v21 = vpop.permute.xlu1 %341  ;;  %914 = vperm.xlu0 %1302, %v1562_v0  }
  0xc2   : > { %v354_v23 = vsel %vm279_vm7, %v353_v20, %v342_v21 }
  0xc3   : > { %v345_v26 = vpop.permute.xlu0 %344 }
  0xc4   : > { %764 = vrot.lane.b32.xlu1 %v1790_v13, %s1412_s24  ;;  %v355_v27 = vsel %vm281_vm8, %v354_v23, %v345_v26  ;;  %s2217_s24 = smov 80  }
  0xc5   : > { %v348_v22 = vpop.permute.xlu1 %347  ;;  %1297 = vset.pattern.permute.xlu1 %v1458_v30  ;;  %1303 = vset.pattern.permute.xlu0 %v1459_v33 }
  0xc6   : > { %v356_v31 = vsel %vm283_vm9, %v355_v27, %v348_v22  ;;  %924 = vperm.xlu0 %1303, %v1562_v0  }
  0xc7   : > { %v364_v34 = vrot.slane %v356_v31, %v1945_v54  ;;  %v374_v57 = vrot.slane %v356_v31, %v1950_v59  ;;  %v359_v35 = vpop.permute.xlu0 %358  ;;  %v394_v39 = vrot.slane %v356_v31, %v1959_v4  ;;  %v384_v47 = vrot.slane %v356_v31, %v1953_v49 }
  0xc8   : > { %773 = vrot.lane.b32.xlu1 %v1803_v19, %s2216_s27  ;;  %v1464_v31 = vmov 31   ;;  %s1138_s27 = sshll.u32 %s1394_s16, 1 }
  0xc9   : > { %v365_v6 = vmul.f32 %v364_v34, %v359_v35  ;;  %v369_v36 = vpop.permute.xlu1 %368 }
  0xca   : > { %v375_v37 = vmul.f32 %v374_v57, %v369_v36  ;;  %946 = vrot.lane.b32.xlu0 %v1790_v13, %s2214_s9  ;;  %s2220_s9 = smov 112  }
  0xcb   : > { %v366_v38 = vadd.f32 %v365_v6, %v325_v24  ;;  %1306 = vset.pattern.permute.xlu0 %v1460_v41 }
  0xcc   : > { %833 = vperm.xlu1 %1297, %v1562_v0   ;;  %v389_v46 = vpop.permute.xlu0 %388 }
  0xcd   : > { %v376_v42 = vadd.f32 %v375_v37, %v366_v38  ;;  %v395_v48 = vmul.f32 %v394_v39, %v389_v46 }
  0xce   : > { %v379_v52 = vpop.permute.xlu1 %378  ;;  %952 = vrot.lane.b32.xlu0 %v1816_v32, %s2215_s21  ;;  %s2222_s21 = smov 31  }
  0xcf   : > { %v385_v53 = vmul.f32 %v384_v47, %v379_v52  ;;  %v1465_v52 = vmov 32  }
  0xd0   : > { %802 = vrot.lane.b32.xlu1 %v1830_v51, %s2217_s24  ;;  %v404_v60 = vpop.permute.xlu0 %403  ;;  %s1035_s24 = sadd.s32 %s1390_s15, %s1138_s27 }
  0xd1   : > { %v386_v13 = vadd.f32 %v385_v53, %v376_v42  ;;  %1300 = vset.pattern.permute.xlu1 %v1461_v55 }
  0xd2   : > { %v398_v61 = vpop.permute.xlu1 %397  ;;  %955 = vrot.lane.b32.xlu0 %v1836_v58, %s2218_s29  ;;  %s1139_s29 = sshll.u32 %s1035_s24, 7 }
  0xd3   : > { %v396_v10 = vadd.f32 %v395_v48, %v386_v13 }
  0xd4   : > { %812 = vrot.lane.b32.xlu1 %v1847_v62, %s2219_s8  ;;  %v410_v8 = vpop.permute.xlu0 %409 }
  0xd6   : > { %v401_v29 = vpop.permute.xlu1 %400  ;;  %985 = vperm.xlu0 %1306, %v1562_v0  }
  0xd7   : > { %v421_v9 = vsel %vm271_vm3, %v398_v61, %v401_v29 }
  0xd8   : > { %822 = vrot.lane.b32.xlu1 %v1860_v15, %s2220_s9  ;;  %v422_v32 = vsel %vm273_vm4, %v421_v9, %v404_v60  ;;  %v416_v11 = vpop.permute.xlu0 %415 }
  0xda   : > { %v407_v40 = vpop.permute.xlu1 %406  ;;  %1307 = vset.pattern.permute.xlu0 %v1462_v14 }
  0xdb   : > { %v423_v12 = vsel %vm275_vm5, %v422_v32, %v407_v40  ;;  %995 = vperm.xlu0 %1307, %v1562_v0  }
  0xdc   : > { %863 = vperm.xlu1 %1300, %v1562_v0   ;;  %v424_v58 = vsel %vm277_vm6, %v423_v12, %v410_v8  ;;  %v430_v16 = vpop.permute.xlu0 %429 }
  0xde   : > { %v413_v43 = vpop.permute.xlu1 %412 }
  0xdf   : > { %v425_v28 = vsel %vm279_vm7, %v424_v58, %v413_v43  ;;  %1310 = vset.pattern.permute.xlu0 %v1408_v1 }
  0xe0   : > { %872 = vrot.lane.b32.xlu1 %v1876_v45, %s2221_s10  ;;  %v426_v17 = vsel %vm281_vm8, %v425_v28, %v416_v11 }
  0xe1   : > { %1301 = vset.pattern.permute.xlu1 %v1463_v25  ;;  %v460_v44 = vpop.permute.xlu0 %459 }
  0xe2   : > { %v419_v18 = vpop.permute.xlu1 %418 }
  0xe3   : > { %v427_v24 = vsel %vm283_vm9, %v426_v17, %v419_v18 }
  0xe4   : > { %v435_v3 = vrot.slane %v427_v24, %v1945_v54  ;;  %878 = vrot.lane.b32.xlu1 %v1803_v19, %s2222_s21  ;;  %v465_v56 = vrot.slane %v427_v24, %v1959_v4  ;;  %v445_v2 = vrot.slane %v427_v24, %v1950_v59  ;;  %v455_v26 = vrot.slane %v427_v24, %v1953_v49 }
  0xe5   : > { %v510_v30 = vpop.permute.xlu0 %509 }
  0xe6   : > { %v466_v50 = vmul.f32 %v465_v56, %v460_v44  ;;  %v440_v5 = vpop.permute.xlu1 %439  ;;  %v436_v7 = vmul.f32 %v435_v3, %v430_v16  ;;  %v1466_v16 = vmov 35   ;;  %v1311_v44 = vld [vmem:[%s2176_s1] sm:$0xff] }
  0xe7   : > { %v446_v20 = vmul.f32 %v445_v2, %v440_v5 }
  0xe8   : > { %v437_v21 = vadd.f32 %v436_v7, %v396_v10  ;;  %904 = vperm.xlu1 %1301, %v1562_v0  }
  0xe9   : > { %v530_v36 = vpop.permute.xlu0 %529 }
  0xea   : > { %v447_v23 = vadd.f32 %v446_v20, %v437_v21 }
  0xeb   : > { %v450_v27 = vpop.permute.xlu1 %449 }
  0xec   : > { %v456_v22 = vmul.f32 %v455_v26, %v450_v27  ;;  %887 = vrot.lane.b32.xlu1 %v1830_v51, %s2211_s4  ;;  %s1467_s4 = smov [#allocation2]  }
  0xed   : > { %1304 = vset.pattern.permute.xlu1 %v1464_v31  ;;  %v550_v42 = vpop.permute.xlu0 %549 }
  0xee   : > { %v457_v33 = vadd.f32 %v456_v22, %v447_v23 }
  0xef   : > { %v492_v34 = vpop.permute.xlu1 %491 }
  0xf0   : > { %890 = vrot.lane.b32.xlu1 %v1847_v62, %s2207_s5  ;;  %v467_v57 = vadd.f32 %v466_v50, %v457_v33  ;;  %v552_v35 = vsel %vm271_vm3, %v1761_v63, %v492_v34  ;;  %s1316_s5 = sshll.u32 %s1467_s4, 4  ;;  %s1317_s5 = int_to_ptr.vmem [resolvable:$false] %s1316_s5 }
  0xf1   : > { %v571_v55 = vpop.permute.xlu0 %570 }
  0xf3   : > { %v501_v6 = vpop.permute.xlu1 %500 }
  0xf4   : > { %v553_v37 = vsel %vm273_vm4, %v552_v35, %v501_v6  ;;  %893 = vrot.lane.b32.xlu1 %v1860_v15, %s2212_s28  ;;  %s2223_s28 = smov 94  }
  0xf5   : > { %v554_v38 = vsel %vm275_vm5, %v553_v37, %v510_v30  ;;  %v600_v11 = vpop.permute.xlu0 %599 }
  0xf7   : > { %v520_v39 = vpop.permute.xlu1 %519 }
  0xf8   : > { %v555_v41 = vsel %vm277_vm6, %v554_v38, %v520_v39  ;;  %934 = vperm.xlu1 %1304, %v1562_v0  }
  0xf9   : > { %v556_v46 = vsel %vm279_vm7, %v555_v41, %v530_v36  ;;  %v606_v43 = vpop.permute.xlu0 %605 }
  0xfb   : > { %v540_v47 = vpop.permute.xlu1 %539 }
  0xfc   : > { %v557_v63 = vsel %vm281_vm8, %v556_v46, %v540_v47  ;;  %943 = vrot.lane.b32.xlu1 %v1876_v45, %s2213_s7 }
  0xfd   : > { %v558_v48 = vsel %vm283_vm9, %v557_v63, %v550_v42  ;;  %1305 = vset.pattern.permute.xlu1 %v1465_v52  ;;  %v612_v25 = vpop.permute.xlu0 %611 }
  0xfe   : > { %v566_v53 = vrot.slane %v558_v48, %v1945_v54  ;;  %v576_v13 = vrot.slane %v558_v48, %v1950_v59  ;;  %v586_v29 = vrot.slane %v558_v48, %v1953_v49  ;;  %v596_v14 = vrot.slane %v558_v48, %v1959_v4 }
  0xff   : > { %v561_v60 = vpop.permute.xlu1 %560 }
 0x100   : > { %v567_v61 = vmul.f32 %v566_v53, %v561_v60  ;;  %949 = vrot.lane.b32.xlu1 %v1803_v19, %s2209_s6  ;;  %v577_v8 = vmul.f32 %v576_v13, %v571_v55  ;;  %s1318_s6 = scalar_lea.vmem %s1317_s5, 256 }
 0x101   : > { %v618_v56 = vpop.permute.xlu0 %617 }
 0x102   : > { %v568_v10 = vadd.f32 %v567_v61, %v467_v57 }
 0x104   : > { %v578_v9 = vadd.f32 %v577_v8, %v568_v10  ;;  %975 = vperm.xlu1 %1305, %v1562_v0   ;;  %v581_v32 = vpop.permute.xlu1 %580 }
 0x105   : > { %v587_v40 = vmul.f32 %v586_v29, %v581_v32  ;;  %v632_v23 = vpop.permute.xlu0 %631 }
 0x107   : > { %v588_v12 = vadd.f32 %v587_v40, %v578_v9 }
 0x108   : > { %958 = vrot.lane.b32.xlu1 %v1830_v51, %s1439_s11  ;;  %s175_s11 = sand.u32 1, %s1382_s13  }
 0x109   : > { %v591_v58 = vpop.permute.xlu1 %590  ;;  %1308 = vset.pattern.permute.xlu1 %v1466_v16  ;;  %s1024_s16 = scalar_lea.sflag [#allocation3], %s175_s11 }
 0x10a   : > { %v597_v19 = vmul.f32 %v596_v14, %v591_v58  ;;  %v662_v34 = vpop.permute.xlu0 %661 }
 0x10c   : > { %v598_v28 = vadd.f32 %v597_v19, %v588_v12  ;;  %961 = vrot.lane.b32.xlu1 %v1847_v62, %s2223_s28  ;;  %s2122_s28 = scalar_lea.hbm %s2178_s3, %s1139_s29 }
 0x10d   : > { %v603_v17 = vpop.permute.xlu1 %602 }
 0x10e   : > { %v623_v0 = vsel %vm271_vm3, %v600_v11, %v603_v17  ;;  %v677_v39 = vpop.permute.xlu0 %676 }
 0x10f   : > { %v624_v51 = vsel %vm273_vm4, %v623_v0, %v606_v43 }
 0x110   : > { %964 = vrot.lane.b32.xlu1 %v1860_v15, %s1441_s20  ;;  %v1014_v15 = vld [vmem:[%s2177_s2] sm:$0xff]  ;;  %s1124_s20 = sshll.u32 %s175_s11, 3 }
 0x111   : > { %v609_v18 = vpop.permute.xlu1 %608  ;;  %s177_s8 = scalar_lea.vmem [#allocation2], %s1124_s20 }
 0x112   : > { %v625_v24 = vsel %vm275_vm5, %v624_v51, %v609_v18  ;;  %v683_v46 = vpop.permute.xlu0 %682  ;;  %s1039_s9 = sshll.u32 %s177_s8, 4  ;;  %s2124_s9 = int_to_ptr.vmem [resolvable:$true] %s1039_s9 }
 0x113   : > { %v626_v62 = vsel %vm277_vm6, %v625_v24, %v612_v25  ;;  %s1312_s15 = scalar_lea.vmem %s2124_s9, 128  ;;  %p1319_p2 = scmp.lt.s32.totalorder %s2124_s9, %s1317_s5 }
 0x114   : > { %1005 = vperm.xlu1 %1308, %v1311_v44   ;;  %p1313_p13 = scmp.ne.s32.totalorder %s2124_s9, %s1312_s15  ;;  %p1320_p4 = scmp.lt.s32.totalorder %s1318_s6, %s1312_s15 }
 0x115   : > { %v615_v3 = vpop.permute.xlu1 %614 }
 0x116   : > { %v627_v2 = vsel %vm279_vm7, %v626_v62, %v615_v3  ;;  %v689_v13 = vpop.permute.xlu0 %688  ;;  %p1314_p0 = pnand %p1313_p13, %p1539_p3  ;;  %p1321_p5 = por %p1320_p4, %p1319_p2 }
 0x117   : > { %v628_v5 = vsel %vm281_vm8, %v627_v2, %v618_v56 }
 0x118   : > { %1309 = vset.pattern.permute.xlu1 %v1408_v1  ;;  %p1315_p1 = pneg %p1314_p0 }
 0x119   : > { %v621_v50 = vpop.permute.xlu1 %620  ;;  %1017 = vperm.xlu1 %1309, %v1014_v15  }
 0x11a   : > { %v629_v7 = vsel %vm283_vm9, %v628_v5, %v621_v50  ;;  %v703_v9 = vpop.permute.xlu0 %702  ;;  %p1322_p6 = pnand %p1321_p5, %p1315_p1 }
 0x11b   : > { %v637_v20 = vrot.slane %v629_v7, %v1945_v54  ;;  %v647_v21 = vrot.slane %v629_v7, %v1950_v59  ;;  %v667_v31 = vrot.slane %v629_v7, %v1959_v4  ;;  %v657_v1 = vrot.slane %v629_v7, %v1953_v49 }
 0x11d   : > { %v642_v26 = vpop.permute.xlu1 %641  ;;  %v638_v27 = vmul.f32 %v637_v20, %v632_v23  ;;  %v668_v6 = vmul.f32 %v667_v31, %v662_v34 }
 0x11e   : > { %v648_v22 = vmul.f32 %v647_v21, %v642_v26 }
 0x11f   : > { %v639_v30 = vadd.f32 %v638_v27, %v598_v28  ;;  %v733_v19 = vpop.permute.xlu0 %732 }
 0x121   : > { %v649_v33 = vadd.f32 %v648_v22, %v639_v30 }
 0x122   : > { %v652_v57 = vpop.permute.xlu1 %651 }
 0x123   : > { %v658_v35 = vmul.f32 %v657_v1, %v652_v57  ;;  %v783_v44 = vpop.permute.xlu0 %782 }
 0x125   : > { %v659_v36 = vadd.f32 %v658_v35, %v649_v33 }
 0x126   : > { %v671_v37 = vpop.permute.xlu1 %670 }
 0x127   : > { %v669_v38 = vadd.f32 %v668_v6, %v659_v36  ;;  %v793_v62 = vpop.permute.xlu0 %792 }
 0x12a   : > { %v674_v41 = vpop.permute.xlu1 %673 }
 0x12b   : > { %v694_v42 = vsel %vm271_vm3, %v671_v37, %v674_v41  ;;  %v844_v2 = vpop.permute.xlu0 %843 }
 0x12c   : > { %v695_v63 = vsel %vm273_vm4, %v694_v42, %v677_v39 }
 0x12e   : > { %v680_v47 = vpop.permute.xlu1 %679 }
 0x12f   : > { %v696_v48 = vsel %vm275_vm5, %v695_v63, %v680_v47 }
 0x130   : > { %v697_v53 = vsel %vm277_vm6, %v696_v48, %v683_v46  ;;  %v854_v5 = vpop.permute.xlu0 %853 }
 0x132   : > { %v686_v52 = vpop.permute.xlu1 %685 }
 0x133   : > { %v698_v60 = vsel %vm279_vm7, %v697_v53, %v686_v52 }
 0x134   : > { %v699_v61 = vsel %vm281_vm8, %v698_v60, %v689_v13  ;;  %v876_v20 = vpop.permute.xlu0 %875 }
 0x136   : > { %v692_v55 = vpop.permute.xlu1 %691 }
 0x137   : > { %v700_v10 = vsel %vm283_vm9, %v699_v61, %v692_v55 }
 0x138   : > { %v708_v8 = vrot.slane %v700_v10, %v1945_v54  ;;  %v718_v29 = vrot.slane %v700_v10, %v1950_v59  ;;  %v738_v14 = vrot.slane %v700_v10, %v1959_v4  ;;  %v728_v16 = vrot.slane %v700_v10, %v1953_v49  ;;  %v882_v30 = vpop.permute.xlu0 %881 }
 0x13a   : > { %v713_v32 = vpop.permute.xlu1 %712  ;;  %v709_v11 = vmul.f32 %v708_v8, %v703_v9  ;;  %v739_v17 = vmul.f32 %v738_v14, %v733_v19 }
 0x13b   : > { %v719_v40 = vmul.f32 %v718_v29, %v713_v32 }
 0x13c   : > { %v710_v12 = vadd.f32 %v709_v11, %v669_v38  ;;  %v885_v35 = vpop.permute.xlu0 %884 }
 0x13e   : > { %v720_v58 = vadd.f32 %v719_v40, %v710_v12 }
 0x13f   : > { %v723_v43 = vpop.permute.xlu1 %722 }
 0x140   : > { %v729_v28 = vmul.f32 %v728_v16, %v723_v43  ;;  %v915_v37 = vpop.permute.xlu0 %914 }
 0x142   : > { %v730_v0 = vadd.f32 %v729_v28, %v720_v58 }
 0x143   : > { %v765_v25 = vpop.permute.xlu1 %764 }
 0x144   : > { %v740_v18 = vadd.f32 %v739_v17, %v730_v0  ;;  %v825_v23 = vsel %vm271_vm3, %v1876_v45, %v765_v25 }
 0x145   : > { %v925_v63 = vpop.permute.xlu0 %924 }
 0x147   : > { %v774_v51 = vpop.permute.xlu1 %773 }
 0x148   : > { %v826_v26 = vsel %vm273_vm4, %v825_v23, %v774_v51 }
 0x149   : > { %v827_v22 = vsel %vm275_vm5, %v826_v26, %v783_v44  ;;  %v947_v29 = vpop.permute.xlu0 %946 }
 0x14a   : > { %v828_v31 = vsel %vm277_vm6, %v827_v22, %v793_v62 }
 0x14b   : > { %v834_v24 = vpop.permute.xlu1 %833 }
 0x14d   : > { %v953_v19 = vpop.permute.xlu0 %952 }
 0x14f   : > { %v803_v3 = vpop.permute.xlu1 %802 }
 0x150   : > { %v829_v1 = vsel %vm279_vm7, %v828_v31, %v803_v3 }
 0x151   : > { %v956_v3 = vpop.permute.xlu0 %955 }
 0x153   : > { %v813_v56 = vpop.permute.xlu1 %812 }
 0x154   : > { %v830_v34 = vsel %vm281_vm8, %v829_v1, %v813_v56 }
 0x157   : > { %v823_v15 = vpop.permute.xlu1 %822 }
 0x158   : > { %v831_v57 = vsel %vm283_vm9, %v830_v34, %v823_v15 }
 0x159   : > { %v839_v36 = vrot.slane %v831_v57, %v1945_v54  ;;  %v849_v46 = vrot.slane %v831_v57, %v1950_v59  ;;  %v859_v60 = vrot.slane %v831_v57, %v1953_v49  ;;  %v869_v32 = vrot.slane %v831_v57, %v1959_v4 }
 0x15b   : > { %v864_v50 = vpop.permute.xlu1 %863  ;;  %v840_v41 = vmul.f32 %v839_v36, %v834_v24  ;;  %v850_v13 = vmul.f32 %v849_v46, %v844_v2  ;;  %v860_v9 = vmul.f32 %v859_v60, %v854_v5 }
 0x15c   : > { %v870_v14 = vmul.f32 %v869_v32, %v864_v50 }
 0x15d   : > { %v841_v48 = vadd.f32 %v840_v41, %v740_v18 }
 0x15f   : > { %v873_v7 = vpop.permute.xlu1 %872  ;;  %v851_v8 = vadd.f32 %v850_v13, %v841_v48 }
 0x160   : > { %v896_v45 = vsel %vm271_vm3, %v873_v7, %v876_v20  ;;  %v986_v7 = vpop.permute.xlu0 %985 }
 0x161   : > { %v861_v12 = vadd.f32 %v860_v9, %v851_v8 }
 0x163   : > { %v879_v21 = vpop.permute.xlu1 %878  ;;  %v871_v43 = vadd.f32 %v870_v14, %v861_v12 }
 0x164   : > { %v897_v38 = vsel %vm273_vm4, %v896_v45, %v879_v21  ;;  %v996_v34 = vpop.permute.xlu0 %995 }
 0x165   : > { %v898_v42 = vsel %vm275_vm5, %v897_v38, %v882_v30 }
 0x166   : > { %v899_v52 = vsel %vm277_vm6, %v898_v42, %v885_v35 }
 0x167   : > { %v905_v27 = vpop.permute.xlu1 %904 }
 0x16b   : > { %v888_v33 = vpop.permute.xlu1 %887 }
 0x16c   : > { %v900_v53 = vsel %vm279_vm7, %v899_v52, %v888_v33 }
 0x16f   : > { %v891_v6 = vpop.permute.xlu1 %890 }
 0x170   : > { %v901_v55 = vsel %vm281_vm8, %v900_v53, %v891_v6 }
 0x173   : > { %v894_v39 = vpop.permute.xlu1 %893 }
 0x174   : > { %v902_v10 = vsel %vm283_vm9, %v901_v55, %v894_v39 }
 0x175   : > { %v910_v11 = vrot.slane %v902_v10, %v1945_v54  ;;  %v920_v28 = vrot.slane %v902_v10, %v1950_v59  ;;  %v930_v24 = vrot.slane %v902_v10, %v1953_v49  ;;  %v940_v15 = vrot.slane %v902_v10, %v1959_v4 }
 0x177   : > { %v935_v47 = vpop.permute.xlu1 %934  ;;  %v911_v58 = vmul.f32 %v910_v11, %v905_v27  ;;  %v921_v51 = vmul.f32 %v920_v28, %v915_v37  ;;  %v931_v2 = vmul.f32 %v930_v24, %v925_v63 }
 0x178   : > { %v941_v27 = vmul.f32 %v940_v15, %v935_v47 }
 0x179   : > { %v912_v0 = vadd.f32 %v911_v58, %v871_v43 }
 0x17b   : > { %v944_v61 = vpop.permute.xlu1 %943  ;;  %v922_v62 = vadd.f32 %v921_v51, %v912_v0 }
 0x17c   : > { %v967_v17 = vsel %vm271_vm3, %v944_v61, %v947_v29 }
 0x17d   : > { %v932_v20 = vadd.f32 %v931_v2, %v922_v62 }
 0x17f   : > { %v950_v40 = vpop.permute.xlu1 %949  ;;  %v942_v31 = vadd.f32 %v941_v27, %v932_v20 }
 0x180   : > { %v968_v25 = vsel %vm273_vm4, %v967_v17, %v950_v40 }
 0x181   : > { %v969_v44 = vsel %vm275_vm5, %v968_v25, %v953_v19 }
 0x182   : > { %v970_v50 = vsel %vm277_vm6, %v969_v44, %v956_v3 }
 0x183   : > { %v976_v16 = vpop.permute.xlu1 %975 }
 0x187   : > { %v959_v18 = vpop.permute.xlu1 %958 }
 0x188   : > { %v971_v5 = vsel %vm279_vm7, %v970_v50, %v959_v18 }
 0x18b   : > { %v962_v56 = vpop.permute.xlu1 %961 }
 0x18c   : > { %v972_v21 = vsel %vm281_vm8, %v971_v5, %v962_v56 }
 0x18f   : > { %v965_v23 = vpop.permute.xlu1 %964 }
 0x190   : > { %v973_v26 = vsel %vm283_vm9, %v972_v21, %v965_v23 }
 0x191   : > { %v981_v22 = vrot.slane %v973_v26, %v1945_v54  ;;  %v991_v30 = vrot.slane %v973_v26, %v1950_v59  ;;  %v1001_v1 = vrot.slane %v973_v26, %v1953_v49  ;;  %v1011_v6 = vrot.slane %v973_v26, %v1959_v4 }
 0x193   : > { %v982_v33 = vmul.f32 %v981_v22, %v976_v16  ;;  %v992_v57 = vmul.f32 %v991_v30, %v986_v7  ;;  %v1006_v36 = vpop.permute.xlu1 %1005  ;;  %v1002_v37 = vmul.f32 %v1001_v1, %v996_v34 }
 0x194   : > { %v1012_v54 = vmul.f32 %v1011_v6, %v1006_v36 }
 0x195   : > { %v983_v35 = vadd.f32 %v982_v33, %v942_v31 }
 0x197   : > { %v993_v45 = vadd.f32 %v992_v57, %v983_v35 }
 0x198   : > { %v1018_v59 = vpop.permute.xlu1 %1017 }
 0x199   : > { %v1003_v38 = vadd.f32 %v1002_v37, %v993_v45 }
 0x19b   : > { %v1013_v39 = vadd.f32 %v1012_v54, %v1003_v38 }
 0x19d   : > { %v1020_v49 = vadd.f32 %v1018_v59, %v1013_v39 }
 0x19f   : > { %v1021_v41 = vmax.f32 %v1020_v49, 0.0 }
 0x1a1   : > { %1022 = vst [vmem:[%s177_s8] sm:$0xff] %v1021_v41 }
 0x1a2   : > { %1325 = shalt.err (!%p1322_p6)
}
 0x1a3   : > { %s1326_s7 = scalar_lea.hbm %s2122_s28, 128  ;;  %s1330_s27 = scalar_lea.hbm %s2178_s3, 512 }
 0x1a4   : > { %p1327_p7 = scmp.ne.s32.totalorder %s2122_s28, %s1326_s7  ;;  %p1331_p11 = scmp.lt.u32.totalorder %s2122_s28, %s2178_s3 }
 0x1a5   : > { %p1332_p12 = scmp.lt.u32.totalorder %s1330_s27, %s1326_s7  ;;  %p1334_p0 = scmp.lt.u32.totalorder %s1326_s7, %s2122_s28 }
 0x1a6   : > { %p1328_p9 = pnand %p1327_p7, %p1539_p3 }
 0x1a7   : > { %p1333_p13 = por %p1332_p12, %p1331_p11 }
 0x1a8   : > { %p1329_p10 = pneg %p1328_p9 }
 0x1a9   : > { %p1335_p1 = por %p1334_p0, %p1333_p13 }
 0x1ab   : > { %p1336_p2 = pnand %p1335_p1, %p1329_p10 }
 0x1ad   : > { %1339 = shalt.err (!%p1336_p2)
}
 0x1ae   : > { %1143 = dma.vmem_to_hbm [thread:$0]  (%p1539_p3), %s2124_s9, 128, %s2122_s28, %s1024_s16  }
 0x1af PF: > { %p1149_p4 = scmp.ge.s32.totalorder %s1406_s19, 2  ;;  %s1051_s8 = sand.u32 1, %s1378_s12  }
 0x1b0   : > { %s1052_s10 = scalar_lea.sflag [#allocation3], %s1051_s8 }
 0x1b1   : > { %p1146_p5 = pnand %p1149_p4, %p1548_p8 }
 0x1b3   : > { %1373 = dma.done.wait (!%p1146_p5), %s1052_s10, 128  }
 0x1b4   : > { %1375 = vsyncadd (!%p1146_p5), %s1052_s10, 4294967168  ;;  %s16_s19 = sadd.s32 1, %s1406_s19   ;;  %s2224_s12 = smov %s1382_s13 }
 0x1b5   : > { %p13_p6 = scmp.ge.s32.totalorder %s16_s19, 6   ;;  %s2225_s13 = smov %s1386_s14 }
 0x1b6   : > { %s2226_s14 = smov %s1557_s30  ;;  %s2227_s15 = smov %s1398_s17 }
 0x1b7   : > { %s2228_s16 = smov %s1402_s18  ;;  %s2229_s17 = smov %s2232_s22 }
 0x1b8   : > { %s2230_s18 = smov %s2236_s23  ;;  %15 = sbr.rel (!%p13_p6) target bundleno = 5 (0x5), region = 70 }
 0x1bf   :  { %1057 = vsyncpa [#allocation3], 1 }
 0x1c0   :  { %1059 = vsyncpa [#allocation3 + $0x1], 1 }

</bundles_post_ra>
